<compile_context>
chip_gen: v7x
topology: tpu7x:2x2x1
jax: 0.10.0
libtpu: 0.0.40
codegen_flags: <defaults>
</compile_context>

<pallas_src>
import functools

import jax
import jax.numpy as jnp
from jax.experimental import pallas as pl
from jax.experimental.pallas import tpu as pltpu

_LANE = 128
_VMEM_CAP_BYTES = 64 * 1024 * 1024  # v7x per-TC physical VMEM (smallest gen)


def _round_up(n, m):
    return ((n + m - 1) // m) * m


def _mlp_kernel(x_ref,
                w1_ref, b1_ref,
                w2_ref, b2_ref,
                w3_ref, b3_ref,
                w4_ref, b4_ref,
                w5_ref, b5_ref,
                o_ref):
    """Fused 5-layer MLP on one (TM, in_dim_p) batch tile.

    Weights are stored (in, out) (transposed vs. PyTorch) in bf16; matmuls
    accumulate in f32 on the MXU, bias-add / ReLU run in f32 on the VPU.
    """
    def layer(h_lowp, w_ref, b_ref, relu):
        acc = jnp.dot(h_lowp, w_ref[...], preferred_element_type=jnp.float32)
        acc = acc + b_ref[...]                       # (1, N) f32 broadcast
        return jnp.maximum(acc, 0.0) if relu else acc

    wdt = w1_ref.dtype
    h = layer(x_ref[...], w1_ref, b1_ref, True)      # act_func (assumed ReLU)
    h = layer(h.astype(wdt), w2_ref, b2_ref, True)
    h = layer(h.astype(wdt), w3_ref, b3_ref, True)
    h = layer(h.astype(wdt), w4_ref, b4_ref, True)
    h = layer(h.astype(wdt), w5_ref, b5_ref, False)  # last_act_func = identity
    o_ref[...] = h.astype(o_ref.dtype)


def _pad_params(params, in_dim_p, param_dtype):
    """Zero-pad feature dims to multiples of 128, cast weights to param_dtype
    (biases stay f32).  Zero padding leaves the math unchanged: padded input
    columns multiply zero weight rows and padded output columns are exactly 0."""
    padded = []
    prev_p = in_dim_p
    for (w, b) in params:
        fan_in, fan_out = w.shape
        fan_out_p = _round_up(fan_out, _LANE)
        w_p = jnp.zeros((prev_p, fan_out_p), param_dtype)
        w_p = w_p.at[:fan_in, :fan_out].set(w.astype(param_dtype))
        b_p = jnp.zeros((1, fan_out_p), jnp.float32)
        b_p = b_p.at[:, :fan_out].set(b.reshape(1, -1).astype(jnp.float32))
        padded.append((w_p, b_p))
        prev_p = fan_out_p
    return padded


def _choose_tile(batch, tile_m):
    """Largest batch tile <= tile_m, but keep >=2 grid steps when the batch is
    big enough so the parallel batch axis can use both v7x TensorCores."""
    b8 = _round_up(batch, 8)
    tm = min(tile_m, b8)
    if b8 > 8 and tm >= b8:          # would collapse to a 1-step grid
        tm = _round_up(b8 // 2, 8)
    return tm


def _param_spec(shape, weight_buffers):
    if weight_buffers == 1:
        # Grid-invariant operand: single-buffer it (no re-DMA, half the VMEM).
        return pl.BlockSpec(shape, lambda i: (0, 0), pipeline_mode=pl.Buffered(1))
    return pl.BlockSpec(shape, lambda i: (0, 0))


@functools.partial(jax.jit,
                   static_argnames=("tile_m", "param_dtype", "weight_buffers"))
def dense_model_forward(x, params, *, tile_m=512, param_dtype=jnp.bfloat16,
                        weight_buffers=1):
    """x: (batch, ...) -> flattened to (batch, in_dim); returns (batch, out_dim) f32."""
    batch = x.shape[0]
    x2d = x.reshape(batch, -1)                        # glue: x.view(x.size(0), -1)
    in_dim = x2d.shape[1]
    out_dim = params[-1][0].shape[1]

    in_dim_p = _round_up(in_dim, _LANE)
    x2d = x2d.astype(param_dtype)                     # bf16 x stream (half bytes)

    tm = _choose_tile(batch, tile_m)
    batch_p = _round_up(batch, tm)
    if batch_p != batch or in_dim_p != in_dim:
        x2d = jnp.pad(x2d, ((0, batch_p - batch), (0, in_dim_p - in_dim)))
    grid = (batch_p // tm,)

    # Lane-dense, bf16 weights (resident across the whole grid).
    padded = _pad_params(params, in_dim_p, param_dtype)
    out_dim_p = padded[-1][0].shape[1]

    x_spec = pl.BlockSpec((tm, in_dim_p), lambda i: (i, 0))
    out_spec = pl.BlockSpec((tm, out_dim_p), lambda i: (i, 0))

    param_specs = []
    flat_args = [x2d]
    for (w_p, b_p) in padded:
        param_specs.append(_param_spec(w_p.shape, weight_buffers))
        param_specs.append(_param_spec(b_p.shape, weight_buffers))
        flat_args += [w_p, b_p]

    # Explicit VMEM budget: resident weights/biases + double-buffered x/out
    # tiles + f32 intermediates, with generous headroom, capped at v7x's 64 MiB.
    w_itemsize = jnp.dtype(param_dtype).itemsize
    weight_bytes = sum(w.size * w_itemsize + b.size * 4 for (w, b) in padded)
    io_bytes = 2 * tm * in_dim_p * w_itemsize + 2 * tm * out_dim_p * w_itemsize
    widest = max([in_dim_p] + [w.shape[1] for (w, _) in padded])
    interm_bytes = 2 * tm * widest * 4
    estimate = weight_bytes + io_bytes + interm_bytes
    vmem_limit = int(min(_VMEM_CAP_BYTES, max(2 * estimate + (4 << 20), 16 << 20)))

    out_p = pl.pallas_call(
        _mlp_kernel,
        out_shape=jax.ShapeDtypeStruct((batch_p, out_dim_p), param_dtype),
        grid=grid,
        in_specs=[x_spec] + param_specs,
        out_specs=out_spec,
        compiler_params=pltpu.CompilerParams(
            dimension_semantics=("parallel",),
            vmem_limit_bytes=vmem_limit),
    )(*flat_args)

    return out_p[:batch, :out_dim].astype(jnp.float32)


def init_params(key, in_dim, lin1, lin2, lin3, lin4, out_dim):
    """Deterministic init matching nn.Linear shapes.

    Weights stored transposed vs. PyTorch: (fan_in, fan_out); bias (fan_out,)."""
    sizes = [(in_dim, lin1), (lin1, lin2), (lin2, lin3), (lin3, lin4), (lin4, out_dim)]
    params = []
    for i, (fan_in, fan_out) in enumerate(sizes):
        kw, kb, key = jax.random.split(jax.random.fold_in(key, i), 3)
        bound = 1.0 / jnp.sqrt(fan_in)
        w = jax.random.uniform(kw, (fan_in, fan_out), jnp.float32, -bound, bound)
        b = jax.random.uniform(kb, (fan_out,), jnp.float32, -bound, bound)
        params.append((w, b))
    return params


def reference_forward(x, params, param_dtype=jnp.bfloat16):
    """Pure-JAX reference mirroring the kernel numerics (bf16 matmul inputs,
    f32 accumulation, f32 bias/ReLU, bf16 output store)."""
    h = x.reshape(x.shape[0], -1).astype(jnp.float32)
    n = len(params)
    for i, (w, b) in enumerate(params):
        acc = jnp.dot(h.astype(param_dtype), w.astype(param_dtype),
                      preferred_element_type=jnp.float32) + b.reshape(1, -1)
        h = jnp.maximum(acc, 0.0) if i < n - 1 else acc
    return h.astype(param_dtype).astype(jnp.float32)


if __name__ == "__main__":
    key = jax.random.PRNGKey(0)
    kx, kp = jax.random.split(key)

    # Small shapes implied by the forward: x is flattened to (batch, in_dim).
    batch = 256                                               # -> grid of 2 batch tiles
    x = jax.random.normal(kx, (batch, 4, 4, 4), jnp.float32)  # in_dim = 64
    in_dim = 4 * 4 * 4
    lin1_size, lin2_size, lin3_size, lin4_size = 128, 64, 128, 32
    out_dim = 16

    params = init_params(kp, in_dim, lin1_size, lin2_size, lin3_size, lin4_size, out_dim)

    try:
        # Preferred path: single-buffered (grid-invariant) weight specs.
        out = dense_model_forward(x, params, weight_buffers=1)
    except Exception:
        # Fallback if this JAX build rejects pl.Buffered(1) specs.
        out = dense_model_forward(x, params, weight_buffers=2)
    out = jax.block_until_ready(out)

    ref = reference_forward(x, params)
    assert out.shape == (batch, out_dim)
    assert jnp.allclose(out, ref, atol=2e-2, rtol=2e-2), \
        float(jnp.max(jnp.abs(out - ref)))

    print("KERNEL_OK")
</pallas_src>

<mosaic_0001>
module attributes {stable_mosaic.version = 11 : i64} {
  func.func @_mlp_kernel(%arg0: i32, %arg1: memref<128x128xbf16, #tpu.memory_space<vmem>>, %arg2: memref<128x128xbf16, #tpu.memory_space<vmem>>, %arg3: memref<1x128xf32, #tpu.memory_space<vmem>>, %arg4: memref<128x128xbf16, #tpu.memory_space<vmem>>, %arg5: memref<1x128xf32, #tpu.memory_space<vmem>>, %arg6: memref<128x128xbf16, #tpu.memory_space<vmem>>, %arg7: memref<1x128xf32, #tpu.memory_space<vmem>>, %arg8: memref<128x128xbf16, #tpu.memory_space<vmem>>, %arg9: memref<1x128xf32, #tpu.memory_space<vmem>>, %arg10: memref<128x128xbf16, #tpu.memory_space<vmem>>, %arg11: memref<1x128xf32, #tpu.memory_space<vmem>>, %arg12: memref<128x128xbf16, #tpu.memory_space<vmem>>) attributes {dimension_semantics = [#tpu.dimension_semantics<parallel>], iteration_bounds = array<i64: 2>, scalar_prefetch = 0 : i64, scratch_operands = 0 : i64, tpu.core_type = #tpu.core_type<tc>, window_params = [{transform_indices = @transform_0, window_bounds = array<i64: 128, 128>}, {pipeline_mode = #tpu.pipeline_mode<synchronous>, transform_indices = @transform_1, window_bounds = array<i64: 128, 128>}, {pipeline_mode = #tpu.pipeline_mode<synchronous>, transform_indices = @transform_2, window_bounds = array<i64: 1, 128>}, {pipeline_mode = #tpu.pipeline_mode<synchronous>, transform_indices = @transform_3, window_bounds = array<i64: 128, 128>}, {pipeline_mode = #tpu.pipeline_mode<synchronous>, transform_indices = @transform_4, window_bounds = array<i64: 1, 128>}, {pipeline_mode = #tpu.pipeline_mode<synchronous>, transform_indices = @transform_5, window_bounds = array<i64: 128, 128>}, {pipeline_mode = #tpu.pipeline_mode<synchronous>, transform_indices = @transform_6, window_bounds = array<i64: 1, 128>}, {pipeline_mode = #tpu.pipeline_mode<synchronous>, transform_indices = @transform_7, window_bounds = array<i64: 128, 128>}, {pipeline_mode = #tpu.pipeline_mode<synchronous>, transform_indices = @transform_8, window_bounds = array<i64: 1, 128>}, {pipeline_mode = #tpu.pipeline_mode<synchronous>, transform_indices = @transform_9, window_bounds = array<i64: 128, 128>}, {pipeline_mode = #tpu.pipeline_mode<synchronous>, transform_indices = @transform_10, window_bounds = array<i64: 1, 128>}, {transform_indices = @transform_11, window_bounds = array<i64: 128, 128>}]} {
    %c0 = arith.constant 0 : index
    %c0_0 = arith.constant 0 : index
    %0 = vector.load %arg1[%c0, %c0_0] : memref<128x128xbf16, #tpu.memory_space<vmem>>, vector<128x128xbf16>
    %c0_1 = arith.constant 0 : index
    %c0_2 = arith.constant 0 : index
    %1 = vector.load %arg2[%c0_1, %c0_2] : memref<128x128xbf16, #tpu.memory_space<vmem>>, vector<128x128xbf16>
    %cst = arith.constant dense<0.000000e+00> : vector<128x128xf32>
    %2 = tpu.matmul %0, %1, %cst {dimension_numbers = #tpu.dot_dimension_numbers<[1], [0], [0], [1], [0, 0, 1, 1], [], []>} : vector<128x128xbf16>, vector<128x128xbf16>, vector<128x128xf32> -> vector<128x128xf32>
    %c0_3 = arith.constant 0 : index
    %c0_4 = arith.constant 0 : index
    %3 = vector.load %arg3[%c0_3, %c0_4] : memref<1x128xf32, #tpu.memory_space<vmem>>, vector<1x128xf32>
    %4 = vector.broadcast %3 : vector<1x128xf32> to vector<128x128xf32>
    %5 = arith.addf %2, %4 : vector<128x128xf32>
    %cst_5 = arith.constant 0.000000e+00 : f32
    %6 = vector.broadcast %cst_5 : f32 to vector<128x128xf32>
    %7 = arith.maximumf %5, %6 : vector<128x128xf32>
    %8 = arith.truncf %7 : vector<128x128xf32> to vector<128x128xbf16>
    %c0_6 = arith.constant 0 : index
    %c0_7 = arith.constant 0 : index
    %9 = vector.load %arg4[%c0_6, %c0_7] : memref<128x128xbf16, #tpu.memory_space<vmem>>, vector<128x128xbf16>
    %cst_8 = arith.constant dense<0.000000e+00> : vector<128x128xf32>
    %10 = tpu.matmul %8, %9, %cst_8 {dimension_numbers = #tpu.dot_dimension_numbers<[1], [0], [0], [1], [0, 0, 1, 1], [], []>} : vector<128x128xbf16>, vector<128x128xbf16>, vector<128x128xf32> -> vector<128x128xf32>
    %c0_9 = arith.constant 0 : index
    %c0_10 = arith.constant 0 : index
    %11 = vector.load %arg5[%c0_9, %c0_10] : memref<1x128xf32, #tpu.memory_space<vmem>>, vector<1x128xf32>
    %12 = vector.broadcast %11 : vector<1x128xf32> to vector<128x128xf32>
    %13 = arith.addf %10, %12 : vector<128x128xf32>
    %cst_11 = arith.constant 0.000000e+00 : f32
    %14 = vector.broadcast %cst_11 : f32 to vector<128x128xf32>
    %15 = arith.maximumf %13, %14 : vector<128x128xf32>
    %16 = arith.truncf %15 : vector<128x128xf32> to vector<128x128xbf16>
    %c0_12 = arith.constant 0 : index
    %c0_13 = arith.constant 0 : index
    %17 = vector.load %arg6[%c0_12, %c0_13] : memref<128x128xbf16, #tpu.memory_space<vmem>>, vector<128x128xbf16>
    %cst_14 = arith.constant dense<0.000000e+00> : vector<128x128xf32>
    %18 = tpu.matmul %16, %17, %cst_14 {dimension_numbers = #tpu.dot_dimension_numbers<[1], [0], [0], [1], [0, 0, 1, 1], [], []>} : vector<128x128xbf16>, vector<128x128xbf16>, vector<128x128xf32> -> vector<128x128xf32>
    %c0_15 = arith.constant 0 : index
    %c0_16 = arith.constant 0 : index
    %19 = vector.load %arg7[%c0_15, %c0_16] : memref<1x128xf32, #tpu.memory_space<vmem>>, vector<1x128xf32>
    %20 = vector.broadcast %19 : vector<1x128xf32> to vector<128x128xf32>
    %21 = arith.addf %18, %20 : vector<128x128xf32>
    %cst_17 = arith.constant 0.000000e+00 : f32
    %22 = vector.broadcast %cst_17 : f32 to vector<128x128xf32>
    %23 = arith.maximumf %21, %22 : vector<128x128xf32>
    %24 = arith.truncf %23 : vector<128x128xf32> to vector<128x128xbf16>
    %c0_18 = arith.constant 0 : index
    %c0_19 = arith.constant 0 : index
    %25 = vector.load %arg8[%c0_18, %c0_19] : memref<128x128xbf16, #tpu.memory_space<vmem>>, vector<128x128xbf16>
    %cst_20 = arith.constant dense<0.000000e+00> : vector<128x128xf32>
    %26 = tpu.matmul %24, %25, %cst_20 {dimension_numbers = #tpu.dot_dimension_numbers<[1], [0], [0], [1], [0, 0, 1, 1], [], []>} : vector<128x128xbf16>, vector<128x128xbf16>, vector<128x128xf32> -> vector<128x128xf32>
    %c0_21 = arith.constant 0 : index
    %c0_22 = arith.constant 0 : index
    %27 = vector.load %arg9[%c0_21, %c0_22] : memref<1x128xf32, #tpu.memory_space<vmem>>, vector<1x128xf32>
    %28 = vector.broadcast %27 : vector<1x128xf32> to vector<128x128xf32>
    %29 = arith.addf %26, %28 : vector<128x128xf32>
    %cst_23 = arith.constant 0.000000e+00 : f32
    %30 = vector.broadcast %cst_23 : f32 to vector<128x128xf32>
    %31 = arith.maximumf %29, %30 : vector<128x128xf32>
    %32 = arith.truncf %31 : vector<128x128xf32> to vector<128x128xbf16>
    %c0_24 = arith.constant 0 : index
    %c0_25 = arith.constant 0 : index
    %33 = vector.load %arg10[%c0_24, %c0_25] : memref<128x128xbf16, #tpu.memory_space<vmem>>, vector<128x128xbf16>
    %cst_26 = arith.constant dense<0.000000e+00> : vector<128x128xf32>
    %34 = tpu.matmul %32, %33, %cst_26 {dimension_numbers = #tpu.dot_dimension_numbers<[1], [0], [0], [1], [0, 0, 1, 1], [], []>} : vector<128x128xbf16>, vector<128x128xbf16>, vector<128x128xf32> -> vector<128x128xf32>
    %c0_27 = arith.constant 0 : index
    %c0_28 = arith.constant 0 : index
    %35 = vector.load %arg11[%c0_27, %c0_28] : memref<1x128xf32, #tpu.memory_space<vmem>>, vector<1x128xf32>
    %36 = vector.broadcast %35 : vector<1x128xf32> to vector<128x128xf32>
    %37 = arith.addf %34, %36 : vector<128x128xf32>
    %38 = arith.truncf %37 : vector<128x128xf32> to vector<128x128xbf16>
    %c0_29 = arith.constant 0 : index
    %c0_30 = arith.constant 0 : index
    %39 = vector.load %arg12[%c0_29, %c0_30] : memref<128x128xbf16, #tpu.memory_space<vmem>>, vector<128x128xbf16>
    tpu.vector_store %arg12[%c0_29, %c0_30], %38 {strides = array<i32>} : memref<128x128xbf16, #tpu.memory_space<vmem>>, vector<128x128xbf16>,
    return
  }
  func.func @transform_0(%arg0: i32) -> (i32, i32) {
    %c0_i32 = arith.constant 0 : i32
    %c0_i32_0 = arith.constant 0 : i32
    return %arg0, %c0_i32 : i32, i32
  }
  func.func @transform_1(%arg0: i32) -> (i32, i32) {
    %c0_i32 = arith.constant 0 : i32
    %c0_i32_0 = arith.constant 0 : i32
    %c0_i32_1 = arith.constant 0 : i32
    return %c0_i32, %c0_i32_0 : i32, i32
  }
  func.func @transform_2(%arg0: i32) -> (i32, i32) {
    %c0_i32 = arith.constant 0 : i32
    %c0_i32_0 = arith.constant 0 : i32
    %c0_i32_1 = arith.constant 0 : i32
    return %c0_i32, %c0_i32_0 : i32, i32
  }
  func.func @transform_3(%arg0: i32) -> (i32, i32) {
    %c0_i32 = arith.constant 0 : i32
    %c0_i32_0 = arith.constant 0 : i32
    %c0_i32_1 = arith.constant 0 : i32
    return %c0_i32, %c0_i32_0 : i32, i32
  }
  func.func @transform_4(%arg0: i32) -> (i32, i32) {
    %c0_i32 = arith.constant 0 : i32
    %c0_i32_0 = arith.constant 0 : i32
    %c0_i32_1 = arith.constant 0 : i32
    return %c0_i32, %c0_i32_0 : i32, i32
  }
  func.func @transform_5(%arg0: i32) -> (i32, i32) {
    %c0_i32 = arith.constant 0 : i32
    %c0_i32_0 = arith.constant 0 : i32
    %c0_i32_1 = arith.constant 0 : i32
    return %c0_i32, %c0_i32_0 : i32, i32
  }
  func.func @transform_6(%arg0: i32) -> (i32, i32) {
    %c0_i32 = arith.constant 0 : i32
    %c0_i32_0 = arith.constant 0 : i32
    %c0_i32_1 = arith.constant 0 : i32
    return %c0_i32, %c0_i32_0 : i32, i32
  }
  func.func @transform_7(%arg0: i32) -> (i32, i32) {
    %c0_i32 = arith.constant 0 : i32
    %c0_i32_0 = arith.constant 0 : i32
    %c0_i32_1 = arith.constant 0 : i32
    return %c0_i32, %c0_i32_0 : i32, i32
  }
  func.func @transform_8(%arg0: i32) -> (i32, i32) {
    %c0_i32 = arith.constant 0 : i32
    %c0_i32_0 = arith.constant 0 : i32
    %c0_i32_1 = arith.constant 0 : i32
    return %c0_i32, %c0_i32_0 : i32, i32
  }
  func.func @transform_9(%arg0: i32) -> (i32, i32) {
    %c0_i32 = arith.constant 0 : i32
    %c0_i32_0 = arith.constant 0 : i32
    %c0_i32_1 = arith.constant 0 : i32
    return %c0_i32, %c0_i32_0 : i32, i32
  }
  func.func @transform_10(%arg0: i32) -> (i32, i32) {
    %c0_i32 = arith.constant 0 : i32
    %c0_i32_0 = arith.constant 0 : i32
    %c0_i32_1 = arith.constant 0 : i32
    return %c0_i32, %c0_i32_0 : i32, i32
  }
  func.func @transform_11(%arg0: i32) -> (i32, i32) {
    %c0_i32 = arith.constant 0 : i32
    %c0_i32_0 = arith.constant 0 : i32
    return %arg0, %c0_i32 : i32, i32
  }
}

module attributes {stable_mosaic.version = 11 : i64} {
  func.func @_mlp_kernel(%arg0: i32, %arg1: memref<128x128xbf16, #tpu.memory_space<vmem>>, %arg2: memref<128x128xbf16, #tpu.memory_space<vmem>>, %arg3: memref<1x128xf32, #tpu.memory_space<vmem>>, %arg4: memref<128x128xbf16, #tpu.memory_space<vmem>>, %arg5: memref<1x128xf32, #tpu.memory_space<vmem>>, %arg6: memref<128x128xbf16, #tpu.memory_space<vmem>>, %arg7: memref<1x128xf32, #tpu.memory_space<vmem>>, %arg8: memref<128x128xbf16, #tpu.memory_space<vmem>>, %arg9: memref<1x128xf32, #tpu.memory_space<vmem>>, %arg10: memref<128x128xbf16, #tpu.memory_space<vmem>>, %arg11: memref<1x128xf32, #tpu.memory_space<vmem>>, %arg12: memref<128x128xbf16, #tpu.memory_space<vmem>>) attributes {dimension_semantics = [#tpu.dimension_semantics<parallel>], iteration_bounds = array<i64: 2>, scalar_prefetch = 0 : i64, scratch_operands = 0 : i64, tpu.core_type = #tpu.core_type<tc>, window_params = [{transform_indices = @transform_0, window_bounds = array<i64: 128, 128>}, {pipeline_mode = #tpu.pipeline_mode<synchronous>, transform_indices = @transform_1, window_bounds = array<i64: 128, 128>}, {pipeline_mode = #tpu.pipeline_mode<synchronous>, transform_indices = @transform_2, window_bounds = array<i64: 1, 128>}, {pipeline_mode = #tpu.pipeline_mode<synchronous>, transform_indices = @transform_3, window_bounds = array<i64: 128, 128>}, {pipeline_mode = #tpu.pipeline_mode<synchronous>, transform_indices = @transform_4, window_bounds = array<i64: 1, 128>}, {pipeline_mode = #tpu.pipeline_mode<synchronous>, transform_indices = @transform_5, window_bounds = array<i64: 128, 128>}, {pipeline_mode = #tpu.pipeline_mode<synchronous>, transform_indices = @transform_6, window_bounds = array<i64: 1, 128>}, {pipeline_mode = #tpu.pipeline_mode<synchronous>, transform_indices = @transform_7, window_bounds = array<i64: 128, 128>}, {pipeline_mode = #tpu.pipeline_mode<synchronous>, transform_indices = @transform_8, window_bounds = array<i64: 1, 128>}, {pipeline_mode = #tpu.pipeline_mode<synchronous>, transform_indices = @transform_9, window_bounds = array<i64: 128, 128>}, {pipeline_mode = #tpu.pipeline_mode<synchronous>, transform_indices = @transform_10, window_bounds = array<i64: 1, 128>}, {transform_indices = @transform_11, window_bounds = array<i64: 128, 128>}]} {
    %c0 = arith.constant 0 : index
    %c0_0 = arith.constant 0 : index
    %0 = vector.load %arg1[%c0, %c0_0] : memref<128x128xbf16, #tpu.memory_space<vmem>>, vector<128x128xbf16>
    %c0_1 = arith.constant 0 : index
    %c0_2 = arith.constant 0 : index
    %1 = vector.load %arg2[%c0_1, %c0_2] : memref<128x128xbf16, #tpu.memory_space<vmem>>, vector<128x128xbf16>
    %cst = arith.constant dense<0.000000e+00> : vector<128x128xf32>
    %2 = tpu.matmul %0, %1, %cst {dimension_numbers = #tpu.dot_dimension_numbers<[1], [0], [0], [1], [0, 0, 1, 1], [], []>} : vector<128x128xbf16>, vector<128x128xbf16>, vector<128x128xf32> -> vector<128x128xf32>
    %c0_3 = arith.constant 0 : index
    %c0_4 = arith.constant 0 : index
    %3 = vector.load %arg3[%c0_3, %c0_4] : memref<1x128xf32, #tpu.memory_space<vmem>>, vector<1x128xf32>
    %4 = vector.broadcast %3 : vector<1x128xf32> to vector<128x128xf32>
    %5 = arith.addf %2, %4 : vector<128x128xf32>
    %cst_5 = arith.constant 0.000000e+00 : f32
    %6 = vector.broadcast %cst_5 : f32 to vector<128x128xf32>
    %7 = arith.maximumf %5, %6 : vector<128x128xf32>
    %8 = arith.truncf %7 : vector<128x128xf32> to vector<128x128xbf16>
    %c0_6 = arith.constant 0 : index
    %c0_7 = arith.constant 0 : index
    %9 = vector.load %arg4[%c0_6, %c0_7] : memref<128x128xbf16, #tpu.memory_space<vmem>>, vector<128x128xbf16>
    %cst_8 = arith.constant dense<0.000000e+00> : vector<128x128xf32>
    %10 = tpu.matmul %8, %9, %cst_8 {dimension_numbers = #tpu.dot_dimension_numbers<[1], [0], [0], [1], [0, 0, 1, 1], [], []>} : vector<128x128xbf16>, vector<128x128xbf16>, vector<128x128xf32> -> vector<128x128xf32>
    %c0_9 = arith.constant 0 : index
    %c0_10 = arith.constant 0 : index
    %11 = vector.load %arg5[%c0_9, %c0_10] : memref<1x128xf32, #tpu.memory_space<vmem>>, vector<1x128xf32>
    %12 = vector.broadcast %11 : vector<1x128xf32> to vector<128x128xf32>
    %13 = arith.addf %10, %12 : vector<128x128xf32>
    %cst_11 = arith.constant 0.000000e+00 : f32
    %14 = vector.broadcast %cst_11 : f32 to vector<128x128xf32>
    %15 = arith.maximumf %13, %14 : vector<128x128xf32>
    %16 = arith.truncf %15 : vector<128x128xf32> to vector<128x128xbf16>
    %c0_12 = arith.constant 0 : index
    %c0_13 = arith.constant 0 : index
    %17 = vector.load %arg6[%c0_12, %c0_13] : memref<128x128xbf16, #tpu.memory_space<vmem>>, vector<128x128xbf16>
    %cst_14 = arith.constant dense<0.000000e+00> : vector<128x128xf32>
    %18 = tpu.matmul %16, %17, %cst_14 {dimension_numbers = #tpu.dot_dimension_numbers<[1], [0], [0], [1], [0, 0, 1, 1], [], []>} : vector<128x128xbf16>, vector<128x128xbf16>, vector<128x128xf32> -> vector<128x128xf32>
    %c0_15 = arith.constant 0 : index
    %c0_16 = arith.constant 0 : index
    %19 = vector.load %arg7[%c0_15, %c0_16] : memref<1x128xf32, #tpu.memory_space<vmem>>, vector<1x128xf32>
    %20 = vector.broadcast %19 : vector<1x128xf32> to vector<128x128xf32>
    %21 = arith.addf %18, %20 : vector<128x128xf32>
    %cst_17 = arith.constant 0.000000e+00 : f32
    %22 = vector.broadcast %cst_17 : f32 to vector<128x128xf32>
    %23 = arith.maximumf %21, %22 : vector<128x128xf32>
    %24 = arith.truncf %23 : vector<128x128xf32> to vector<128x128xbf16>
    %c0_18 = arith.constant 0 : index
    %c0_19 = arith.constant 0 : index
    %25 = vector.load %arg8[%c0_18, %c0_19] : memref<128x128xbf16, #tpu.memory_space<vmem>>, vector<128x128xbf16>
    %cst_20 = arith.constant dense<0.000000e+00> : vector<128x128xf32>
    %26 = tpu.matmul %24, %25, %cst_20 {dimension_numbers = #tpu.dot_dimension_numbers<[1], [0], [0], [1], [0, 0, 1, 1], [], []>} : vector<128x128xbf16>, vector<128x128xbf16>, vector<128x128xf32> -> vector<128x128xf32>
    %c0_21 = arith.constant 0 : index
    %c0_22 = arith.constant 0 : index
    %27 = vector.load %arg9[%c0_21, %c0_22] : memref<1x128xf32, #tpu.memory_space<vmem>>, vector<1x128xf32>
    %28 = vector.broadcast %27 : vector<1x128xf32> to vector<128x128xf32>
    %29 = arith.addf %26, %28 : vector<128x128xf32>
    %cst_23 = arith.constant 0.000000e+00 : f32
    %30 = vector.broadcast %cst_23 : f32 to vector<128x128xf32>
    %31 = arith.maximumf %29, %30 : vector<128x128xf32>
    %32 = arith.truncf %31 : vector<128x128xf32> to vector<128x128xbf16>
    %c0_24 = arith.constant 0 : index
    %c0_25 = arith.constant 0 : index
    %33 = vector.load %arg10[%c0_24, %c0_25] : memref<128x128xbf16, #tpu.memory_space<vmem>>, vector<128x128xbf16>
    %cst_26 = arith.constant dense<0.000000e+00> : vector<128x128xf32>
    %34 = tpu.matmul %32, %33, %cst_26 {dimension_numbers = #tpu.dot_dimension_numbers<[1], [0], [0], [1], [0, 0, 1, 1], [], []>} : vector<128x128xbf16>, vector<128x128xbf16>, vector<128x128xf32> -> vector<128x128xf32>
    %c0_27 = arith.constant 0 : index
    %c0_28 = arith.constant 0 : index
    %35 = vector.load %arg11[%c0_27, %c0_28] : memref<1x128xf32, #tpu.memory_space<vmem>>, vector<1x128xf32>
    %36 = vector.broadcast %35 : vector<1x128xf32> to vector<128x128xf32>
    %37 = arith.addf %34, %36 : vector<128x128xf32>
    %38 = arith.truncf %37 : vector<128x128xf32> to vector<128x128xbf16>
    %c0_29 = arith.constant 0 : index
    %c0_30 = arith.constant 0 : index
    %39 = vector.load %arg12[%c0_29, %c0_30] : memref<128x128xbf16, #tpu.memory_space<vmem>>, vector<128x128xbf16>
    tpu.vector_store %arg12[%c0_29, %c0_30], %38 {strides = array<i32>} : memref<128x128xbf16, #tpu.memory_space<vmem>>, vector<128x128xbf16>,
    return
  }
  func.func @transform_0(%arg0: i32) -> (i32, i32) {
    %c0_i32 = arith.constant 0 : i32
    %c0_i32_0 = arith.constant 0 : i32
    return %arg0, %c0_i32 : i32, i32
  }
  func.func @transform_1(%arg0: i32) -> (i32, i32) {
    %c0_i32 = arith.constant 0 : i32
    %c0_i32_0 = arith.constant 0 : i32
    %c0_i32_1 = arith.constant 0 : i32
    return %c0_i32, %c0_i32_0 : i32, i32
  }
  func.func @transform_2(%arg0: i32) -> (i32, i32) {
    %c0_i32 = arith.constant 0 : i32
    %c0_i32_0 = arith.constant 0 : i32
    %c0_i32_1 = arith.constant 0 : i32
    return %c0_i32, %c0_i32_0 : i32, i32
  }
  func.func @transform_3(%arg0: i32) -> (i32, i32) {
    %c0_i32 = arith.constant 0 : i32
    %c0_i32_0 = arith.constant 0 : i32
    %c0_i32_1 = arith.constant 0 : i32
    return %c0_i32, %c0_i32_0 : i32, i32
  }
  func.func @transform_4(%arg0: i32) -> (i32, i32) {
    %c0_i32 = arith.constant 0 : i32
    %c0_i32_0 = arith.constant 0 : i32
    %c0_i32_1 = arith.constant 0 : i32
    return %c0_i32, %c0_i32_0 : i32, i32
  }
  func.func @transform_5(%arg0: i32) -> (i32, i32) {
    %c0_i32 = arith.constant 0 : i32
    %c0_i32_0 = arith.constant 0 : i32
    %c0_i32_1 = arith.constant 0 : i32
    return %c0_i32, %c0_i32_0 : i32, i32
  }
  func.func @transform_6(%arg0: i32) -> (i32, i32) {
    %c0_i32 = arith.constant 0 : i32
    %c0_i32_0 = arith.constant 0 : i32
    %c0_i32_1 = arith.constant 0 : i32
    return %c0_i32, %c0_i32_0 : i32, i32
  }
  func.func @transform_7(%arg0: i32) -> (i32, i32) {
    %c0_i32 = arith.constant 0 : i32
    %c0_i32_0 = arith.constant 0 : i32
    %c0_i32_1 = arith.constant 0 : i32
    return %c0_i32, %c0_i32_0 : i32, i32
  }
  func.func @transform_8(%arg0: i32) -> (i32, i32) {
    %c0_i32 = arith.constant 0 : i32
    %c0_i32_0 = arith.constant 0 : i32
    %c0_i32_1 = arith.constant 0 : i32
    return %c0_i32, %c0_i32_0 : i32, i32
  }
  func.func @transform_9(%arg0: i32) -> (i32, i32) {
    %c0_i32 = arith.constant 0 : i32
    %c0_i32_0 = arith.constant 0 : i32
    %c0_i32_1 = arith.constant 0 : i32
    return %c0_i32, %c0_i32_0 : i32, i32
  }
  func.func @transform_10(%arg0: i32) -> (i32, i32) {
    %c0_i32 = arith.constant 0 : i32
    %c0_i32_0 = arith.constant 0 : i32
    %c0_i32_1 = arith.constant 0 : i32
    return %c0_i32, %c0_i32_0 : i32, i32
  }
  func.func @transform_11(%arg0: i32) -> (i32, i32) {
    %c0_i32 = arith.constant 0 : i32
    %c0_i32_0 = arith.constant 0 : i32
    return %arg0, %c0_i32 : i32, i32
  }
}

</mosaic_0001>

<bundles_post_ra>
// kernel: dense_model_forward.1
= control target key start
LH: loop header
LB: loop body
LE: loop exit
PB: predicated region body
PF: predicated region fallthrough
CT: control target
= control target key end

     0   :  { %s2050_s17 = smov 0   ;;  %s2265_s0 = inlined_call_operand.vmem [shape: bf16[256,128], index: 0, kind: input, shape index: {}]   ;;  %s2266_s1 = inlined_call_operand.vmem [shape: bf16[128,128], index: 1, kind: input, shape index: {}]   ;;  %s2267_s2 = inlined_call_operand.vmem [shape: f32[1,128], index: 2, kind: input, shape index: {}]   ;;  %s2268_s3 = inlined_call_operand.vmem [shape: bf16[128,128], index: 3, kind: input, shape index: {}]   ;;  %s2269_s4 = inlined_call_operand.vmem [shape: f32[1,128], index: 4, kind: input, shape index: {}]   ;;  %s2270_s5 = inlined_call_operand.vmem [shape: bf16[128,128], index: 5, kind: input, shape index: {}]   ;;  %s2271_s6 = inlined_call_operand.vmem [shape: f32[1,128], index: 6, kind: input, shape index: {}]   ;;  %s2272_s7 = inlined_call_operand.vmem [shape: bf16[128,128], index: 7, kind: input, shape index: {}]   ;;  %s2273_s8 = inlined_call_operand.vmem [shape: f32[1,128], index: 8, kind: input, shape index: {}]   ;;  %s2274_s9 = inlined_call_operand.vmem [shape: bf16[128,128], index: 9, kind: input, shape index: {}]   ;;  %s2275_s10 = inlined_call_operand.vmem [shape: f32[1,128], index: 10, kind: input, shape index: {}]   ;;  %s2276_s11 = inlined_call_operand.vmem [shape: bf16[256,128], index: 11, kind: output, shape index: {}]  }
   0x1 LB: > { %s1527_s18 = sadd.s32 4294967295, %s1988_s17   ;;  %p1531_p0 = scmp.ge.s32.totalorder %s1988_s17, 1  ;;  %s1988_s17 = sphi %s2050_s17, %s21_s17  }
   0x2   : > { %p338_p1 = scmp.lt.s32.totalorder %s1988_s17, 3 }
   0x4   : > { %p339_p2 = pnand %p1531_p0, %p338_p1 }
   0x5   : > { %v1934_v0 = vld [vmem:[%s2266_s1] sm:$0xff] (!%p339_p2)   ;;  %s1532_s21 = sshll.u32 (!%p339_p2), %s1527_s18, 4  ;;  %v1935_v1 = vld [vmem:[%s2266_s1 + $0x8] sm:$0xff] (!%p339_p2)   ;;  %v1936_v2 = vld [vmem:[%s2266_s1 + $0x10] sm:$0xff] (!%p339_p2)  }
   0x6   : > { %342 = sbr.rel (%p339_p2) target bundleno = 1170 (0x492), region = 64  ;;  %p379_p3 = scmp.lt.s32.totalorder (!%p339_p2), %s1532_s21, 31  ;;  %1750 = vmatprep.subr.bf16.mxu0 (!%p339_p2), %v1934_v0  ;;  %v1937_v3 = vld [vmem:[%s2266_s1 + $0x18] sm:$0xff] (!%p339_p2)   ;;  %v1938_v5 = vld [vmem:[%s2266_s1 + $0x20] sm:$0xff] (!%p339_p2)   ;;  %v1939_v6 = vld [vmem:[%s2266_s1 + $0x28] sm:$0xff] (!%p339_p2)  }
   0x7   : > { %1751 = vmatpush3.bf16.msra.mxu0 (!%p339_p2), %v1934_v0  ;;  %v1950_v7 = vld [vmem:[%s2268_s3] sm:$0xff] (!%p339_p2)   ;;  %v1951_v8 = vld [vmem:[%s2268_s3 + $0x8] sm:$0xff] (!%p339_p2)   ;;  %v1940_v9 = vld [vmem:[%s2266_s1 + $0x30] sm:$0xff] (!%p339_p2)  }
   0x8   : > { %1752 = vmatprep.subr.bf16.mxu0 (!%p339_p2), %v1935_v1  ;;  %1782 = vmatprep.subr.bf16.mxu1 (!%p339_p2), %v1950_v7  ;;  %v1952_v10 = vld [vmem:[%s2268_s3 + $0x10] sm:$0xff] (!%p339_p2)   ;;  %v1941_v11 = vld [vmem:[%s2266_s1 + $0x38] sm:$0xff] (!%p339_p2)   ;;  %v1954_v13 = vld [vmem:[%s2268_s3 + $0x20] sm:$0xff] (!%p339_p2)  }
   0x9   : > { %1783 = vmatpush3.bf16.msra.mxu1 (!%p339_p2), %v1950_v7  ;;  %v1953_v12 = vld [vmem:[%s2268_s3 + $0x18] sm:$0xff] (!%p339_p2)   ;;  %v1955_v16 = vld [vmem:[%s2268_s3 + $0x28] sm:$0xff] (!%p339_p2)   ;;  %v1956_v22 = vld [vmem:[%s2268_s3 + $0x30] sm:$0xff] (!%p339_p2)  }
   0xa   : > { %1784 = vmatprep.subr.bf16.mxu1 (!%p339_p2), %v1951_v8  ;;  %v1957_v23 = vld [vmem:[%s2268_s3 + $0x38] sm:$0xff] (!%p339_p2)   ;;  %v1958_v24 = vld [vmem:[%s2270_s5] sm:$0xff] (!%p339_p2)   ;;  %v1959_v25 = vld [vmem:[%s2270_s5 + $0x8] sm:$0xff] (!%p339_p2)  }
   0xb   : > { %1753 = vmatpush3.bf16.msra.mxu0 (!%p339_p2), %v1935_v1  ;;  %v1960_v26 = vld [vmem:[%s2270_s5 + $0x10] sm:$0xff] (!%p339_p2)   ;;  %v1961_v27 = vld [vmem:[%s2270_s5 + $0x18] sm:$0xff] (!%p339_p2)   ;;  %v1962_v28 = vld [vmem:[%s2270_s5 + $0x20] sm:$0xff] (!%p339_p2)  }
   0xc   : > { %1754 = vmatprep.subr.bf16.mxu0 (!%p339_p2), %v1936_v2  ;;  %v1963_v29 = vld [vmem:[%s2270_s5 + $0x28] sm:$0xff] (!%p339_p2)   ;;  %v1536_v30 = vld [vmem:[%s2267_s2] ss:$0 sm:$0xff] (!%p339_p2) }
   0xd   : > { %s2278_s21 = smov (!%p379_p3, %s1532_s21), 31  ;;  %1785 = vmatpush3.bf16.msra.mxu1 %v1951_v8 }
   0xe   : > { %s1533_s26 = sshll.u32 %s2278_s21, 2  ;;  %1786 = vmatprep.subr.bf16.mxu1 %v1952_v10 }
   0xf   : > { %s2075_s29 = scalar_lea.vmem %s2265_s0, %s1533_s26  ;;  %1755 = vmatpush3.bf16.msra.mxu0 %v1936_v2  ;;  %s2252_s19 = scalar_lea.vmem %s2276_s11, %s1533_s26 }
  0x10   : > { %v1942_v4 = vld [vmem:[%s2075_s29] sm:$0xff]   ;;  %1756 = vmatprep.subr.bf16.mxu0 %v1937_v3  ;;  %v1943_v14 = vld [vmem:[%s2075_s29 + $0x8] sm:$0xff]   ;;  %v1944_v15 = vld [vmem:[%s2075_s29 + $0x10] sm:$0xff]  }
  0x11   : > { %1766 = vmatprep.mubr.bf16.mxu0 %v1942_v4  ;;  %1787 = vmatpush3.bf16.msra.mxu1 %v1952_v10  ;;  %v1945_v17 = vld [vmem:[%s2075_s29 + $0x18] sm:$0xff]   ;;  %v1946_v18 = vld [vmem:[%s2075_s29 + $0x20] sm:$0xff]   ;;  %v1947_v19 = vld [vmem:[%s2075_s29 + $0x28] sm:$0xff]  }
  0x12   : > { %1788 = vmatprep.subr.bf16.mxu1 %v1953_v12  ;;  %v1948_v20 = vld [vmem:[%s2075_s29 + $0x30] sm:$0xff]   ;;  %v1949_v21 = vld [vmem:[%s2075_s29 + $0x38] sm:$0xff]  }
  0x13   : > { %1757 = vmatpush3.bf16.msra.mxu0 %v1937_v3 }
  0x14   : > { %1758 = vmatprep.subr.bf16.mxu0 %v1938_v5 }
  0x15   : > { %1789 = vmatpush3.bf16.msra.mxu1 %v1953_v12 }
  0x16   : > { %1790 = vmatprep.subr.bf16.mxu1 %v1954_v13 }
  0x17   : > { %1759 = vmatpush3.bf16.msra.mxu0 %v1938_v5 }
  0x18   : > { %1760 = vmatprep.subr.bf16.mxu0 %v1939_v6 }
  0x19   : > { %1791 = vmatpush3.bf16.msra.mxu1 %v1954_v13 }
  0x1a   : > { %1792 = vmatprep.subr.bf16.mxu1 %v1955_v16 }
  0x1b   : > { %1761 = vmatpush3.bf16.msra.mxu0 %v1939_v6 }
  0x1c   : > { %1762 = vmatprep.subr.bf16.mxu0 %v1940_v9 }
  0x1d   : > { %1793 = vmatpush3.bf16.msra.mxu1 %v1955_v16 }
  0x1e   : > { %1794 = vmatprep.subr.bf16.mxu1 %v1956_v22 }
  0x1f   : > { %1763 = vmatpush3.bf16.msra.mxu0 %v1940_v9 }
  0x20   : > { %1764 = vmatprep.subr.bf16.mxu0 %v1941_v11 }
  0x21   : > { %1795 = vmatpush3.bf16.msra.mxu1 %v1956_v22 }
  0x22   : > { %1796 = vmatprep.subr.bf16.mxu1 %v1957_v23 }
  0x23   : > { %1765 = vmatpush3.bf16.msra.mxu0 %v1941_v11 }
  0x24   : > { %1814 = vmatprep.subr.bf16.mxu0 %v1958_v24 }
  0x25   : > { %1797 = vmatpush3.bf16.msra.mxu1 %v1957_v23  ;;  %v1964_v23 = vld [vmem:[%s2270_s5 + $0x30] sm:$0xff]  }
  0x26   : > { %1767 = vmatmul.mubr.bf16.vlgmr.msra.gmra.mrb[0].mxu0 %v1943_v14 }
  0x27   : > { %1770 = vmatprep.mubr.bf16.mxu0 %v1944_v15  ;;  %1815 = vmatpush3.bf16.msra.mxu0 %v1958_v24  ;;  %v1965_v24 = vld [vmem:[%s2270_s5 + $0x38] sm:$0xff]  }
  0x28   : > { %1816 = vmatprep.subr.bf16.mxu0 %v1959_v25 }
  0x2b   : > { %1817 = vmatpush3.bf16.msra.mxu0 %v1959_v25  ;;  %v1966_v25 = vld [vmem:[%s2272_s7] sm:$0xff]  }
  0x2c   : > { %1818 = vmatprep.subr.bf16.mxu0 %v1960_v26  ;;  %1846 = vmatprep.subr.bf16.mxu1 %v1966_v25 }
  0x2e   : > { %1771 = vmatmul.mubr.bf16.gmra.mrb[4].mxu0 %v1945_v17 }
  0x2f   : > { %1774 = vmatprep.mubr.bf16.mxu0 %v1946_v18  ;;  %1819 = vmatpush3.bf16.msra.mxu0 %v1960_v26  ;;  %v1967_v26 = vld [vmem:[%s2272_s7 + $0x8] sm:$0xff]  }
  0x30   : > { %1820 = vmatprep.subr.bf16.mxu0 %v1961_v27 }
  0x33   : > { %1821 = vmatpush3.bf16.msra.mxu0 %v1961_v27  ;;  %v1968_v27 = vld [vmem:[%s2272_s7 + $0x10] sm:$0xff]  }
  0x34   : > { %1822 = vmatprep.subr.bf16.mxu0 %v1962_v28 }
  0x36   : > { %1775 = vmatmul.mubr.bf16.gmra.mrb[8].mxu0 %v1947_v19 }
  0x37   : > { %1778 = vmatprep.mubr.bf16.mxu0 %v1948_v20  ;;  %1823 = vmatpush3.bf16.msra.mxu0 %v1962_v28  ;;  %v1969_v28 = vld [vmem:[%s2272_s7 + $0x18] sm:$0xff]  }
  0x38   : > { %1824 = vmatprep.subr.bf16.mxu0 %v1963_v29 }
  0x3b   : > { %1825 = vmatpush3.bf16.msra.mxu0 %v1963_v29  ;;  %v1970_v29 = vld [vmem:[%s2272_s7 + $0x20] sm:$0xff]  }
  0x3c   : > { %1826 = vmatprep.subr.bf16.mxu0 %v1964_v23 }
  0x3e   : > { %1779 = vmatmul.mubr.bf16.gmra.mrb[12].mxu0 %v1949_v21 }
  0x3f   : > { %1827 = vmatpush3.bf16.msra.mxu0 %v1964_v23 }
  0x40   : > { %1828 = vmatprep.subr.bf16.mxu0 %v1965_v24 }
  0x43   : > { %1829 = vmatpush3.bf16.msra.mxu0 %v1965_v24  ;;  %v1972_v24 = vld [vmem:[%s2272_s7 + $0x30] sm:$0xff]  }
  0xf9   : > { %v1768_v31 = vpop.f32.mrb[0].mxu0 }
  0xfa   : > { %v569_v32 = vadd.f32 %v1768_v31, %v1536_v30  ;;  %v560_v33 = vpop.f32.mrb[1].mxu0  ;;  %v1553_v31 = vld [vmem:[%s2269_s4] ss:$0 sm:$0xff] }
  0xfb   : > { %v561_v34 = vadd.f32 %v1536_v30, %v560_v33  ;;  %v1769_v35 = vpop.f32.mrb[2].mxu0 }
  0xfc   : > { %v572_v36 = vadd.f32 %v1769_v35, %v1536_v30  ;;  %v563_v37 = vpop.f32.mrb[3].mxu0  ;;  %v625_v39 = vmax.f32 %v569_v32, 0.0 }
  0xfd   : > { %v564_v38 = vadd.f32 %v1536_v30, %v563_v37  ;;  %v623_v41 = vmax.f32 %v561_v34, 0.0 }
  0xfe   : > { %v626_v40 = vmax.f32 %v572_v36, 0.0 }
  0xff   : > { %v624_v42 = vmax.f32 %v564_v38, 0.0 }
 0x100   : > { %v640_v43 = vpack.c.bf16 %v626_v40, %v625_v39 }
 0x101   : > { %v1772_v44 = vpop.f32.mrb[4].mxu0  ;;  %v639_v45 = vpack.c.bf16 %v624_v42, %v623_v41 }
 0x102   : > { %v585_v46 = vadd.f32 %v1772_v44, %v1536_v30  ;;  %v576_v47 = vpop.f32.mrb[5].mxu0 }
 0x103   : > { %v577_v48 = vadd.f32 %v1536_v30, %v576_v47  ;;  %v1773_v49 = vpop.f32.mrb[6].mxu0  ;;  %1798 = vmatprep.mubr.bf16.mxu1 %v639_v45 }
 0x104   : > { %v588_v50 = vadd.f32 %v1773_v49, %v1536_v30  ;;  %v579_v51 = vpop.f32.mrb[7].mxu0  ;;  %1799 = vmatmul.mubr.bf16.vlgmr.msra.gmra.mrb[0].mxu1 %v640_v43  ;;  %v629_v53 = vmax.f32 %v585_v46, 0.0 }
 0x105   : > { %v580_v52 = vadd.f32 %v1536_v30, %v579_v51  ;;  %v627_v55 = vmax.f32 %v577_v48, 0.0  ;;  %1847 = vmatpush3.bf16.msra.mxu1 %v1966_v25  ;;  %v1973_v25 = vld [vmem:[%s2272_s7 + $0x38] sm:$0xff]  }
 0x106   : > { %v630_v54 = vmax.f32 %v588_v50, 0.0  ;;  %1848 = vmatprep.subr.bf16.mxu1 %v1967_v26 }
 0x107   : > { %v628_v56 = vmax.f32 %v580_v52, 0.0 }
 0x108   : > { %v642_v57 = vpack.c.bf16 %v630_v54, %v629_v53 }
 0x109   : > { %v641_v58 = vpack.c.bf16 %v628_v56, %v627_v55  ;;  %v1776_v59 = vpop.f32.mrb[8].mxu0  ;;  %1849 = vmatpush3.bf16.msra.mxu1 %v1967_v26  ;;  %v1974_v26 = vld [vmem:[%s2274_s9] sm:$0xff]  }
 0x10a   : > { %v601_v60 = vadd.f32 %v1776_v59, %v1536_v30  ;;  %v592_v61 = vpop.f32.mrb[9].mxu0  ;;  %1850 = vmatprep.subr.bf16.mxu1 %v1968_v27  ;;  %1878 = vmatprep.subr.bf16.mxu0 %v1974_v26 }
 0x10b   : > { %v593_v62 = vadd.f32 %v1536_v30, %v592_v61  ;;  %v1777_v63 = vpop.f32.mrb[10].mxu0  ;;  %1802 = vmatprep.mubr.bf16.mxu1 %v641_v58 }
 0x10c   : > { %v604_v0 = vadd.f32 %v1777_v63, %v1536_v30  ;;  %v595_v1 = vpop.f32.mrb[11].mxu0  ;;  %1803 = vmatmul.mubr.bf16.gmra.mrb[4].mxu1 %v642_v57  ;;  %v633_v3 = vmax.f32 %v601_v60, 0.0 }
 0x10d   : > { %v596_v2 = vadd.f32 %v1536_v30, %v595_v1  ;;  %v631_v5 = vmax.f32 %v593_v62, 0.0  ;;  %1851 = vmatpush3.bf16.msra.mxu1 %v1968_v27  ;;  %v1975_v27 = vld [vmem:[%s2274_s9 + $0x8] sm:$0xff]  }
 0x10e   : > { %v634_v4 = vmax.f32 %v604_v0, 0.0  ;;  %1852 = vmatprep.subr.bf16.mxu1 %v1969_v28 }
 0x10f   : > { %v632_v6 = vmax.f32 %v596_v2, 0.0 }
 0x110   : > { %v644_v7 = vpack.c.bf16 %v634_v4, %v633_v3 }
 0x111   : > { %v643_v8 = vpack.c.bf16 %v632_v6, %v631_v5  ;;  %v1780_v9 = vpop.f32.mrb[12].mxu0  ;;  %1853 = vmatpush3.bf16.msra.mxu1 %v1969_v28  ;;  %v1976_v28 = vld [vmem:[%s2274_s9 + $0x10] sm:$0xff]  }
 0x112   : > { %v617_v10 = vadd.f32 %v1780_v9, %v1536_v30  ;;  %v608_v11 = vpop.f32.mrb[13].mxu0  ;;  %1854 = vmatprep.subr.bf16.mxu1 %v1970_v29 }
 0x113   : > { %v609_v12 = vadd.f32 %v1536_v30, %v608_v11  ;;  %v1781_v13 = vpop.f32.mrb[14].mxu0  ;;  %1806 = vmatprep.mubr.bf16.mxu1 %v643_v8 }
 0x114   : > { %v620_v14 = vadd.f32 %v1781_v13, %v1536_v30  ;;  %v611_v15 = vpop.f32.mrb[15].mxu0  ;;  %1807 = vmatmul.mubr.bf16.gmra.mrb[8].mxu1 %v644_v7  ;;  %v637_v17 = vmax.f32 %v617_v10, 0.0 }
 0x115   : > { %v612_v16 = vadd.f32 %v1536_v30, %v611_v15  ;;  %v635_v19 = vmax.f32 %v609_v12, 0.0  ;;  %v1971_v30 = vld [vmem:[%s2272_s7 + $0x28] sm:$0xff]   ;;  %1855 = vmatpush3.bf16.msra.mxu1 %v1970_v29  ;;  %v2190_v29 = vld [vmem:[%s2274_s9 + $0x18] sm:$0xff]  }
 0x116   : > { %v638_v18 = vmax.f32 %v620_v14, 0.0  ;;  %1856 = vmatprep.subr.bf16.mxu1 %v1971_v30 }
 0x117   : > { %v636_v20 = vmax.f32 %v612_v16, 0.0 }
 0x118   : > { %v646_v21 = vpack.c.bf16 %v638_v18, %v637_v17 }
 0x119   : > { %v645_v22 = vpack.c.bf16 %v636_v20, %v635_v19  ;;  %1857 = vmatpush3.bf16.msra.mxu1 %v1971_v30  ;;  %v2196_v30 = vld [vmem:[%s2274_s9 + $0x20] sm:$0xff]  }
 0x11a   : > { %1858 = vmatprep.subr.bf16.mxu1 %v1972_v24 }
 0x11b   : > { %1810 = vmatprep.mubr.bf16.mxu1 %v645_v22 }
 0x11c   : > { %1811 = vmatmul.mubr.bf16.gmra.mrb[12].mxu1 %v646_v21 }
 0x11d   : > { %1859 = vmatpush3.bf16.msra.mxu1 %v1972_v24 }
 0x11e   : > { %1860 = vmatprep.subr.bf16.mxu1 %v1973_v25 }
 0x121   : > { %1861 = vmatpush3.bf16.msra.mxu1 %v1973_v25  ;;  %v1980_v25 = vld [vmem:[%s2274_s9 + $0x30] sm:$0xff]  }
 0x122   : > { %1910 = vmatprep.subr.bf16.mxu1 %v1974_v26 }
 0x1d7   : > { %v1800_v32 = vpop.f32.mrb[0].mxu1 }
 0x1d8   : > { %v761_v33 = vadd.f32 %v1800_v32, %v1553_v31  ;;  %v752_v34 = vpop.f32.mrb[1].mxu1  ;;  %v2211_v32 = vld [vmem:[%s2271_s6] ss:$0 sm:$0xff] }
 0x1d9   : > { %v753_v35 = vadd.f32 %v1553_v31, %v752_v34  ;;  %v1801_v36 = vpop.f32.mrb[2].mxu1 }
 0x1da   : > { %v764_v37 = vadd.f32 %v1801_v36, %v1553_v31  ;;  %v755_v38 = vpop.f32.mrb[3].mxu1  ;;  %v817_v40 = vmax.f32 %v761_v33, 0.0 }
 0x1db   : > { %v756_v39 = vadd.f32 %v1553_v31, %v755_v38  ;;  %v815_v42 = vmax.f32 %v753_v35, 0.0 }
 0x1dc   : > { %v818_v41 = vmax.f32 %v764_v37, 0.0 }
 0x1dd   : > { %v816_v43 = vmax.f32 %v756_v39, 0.0 }
 0x1de   : > { %v832_v44 = vpack.c.bf16 %v818_v41, %v817_v40 }
 0x1df   : > { %v831_v45 = vpack.c.bf16 %v816_v43, %v815_v42  ;;  %v1804_v46 = vpop.f32.mrb[4].mxu1 }
 0x1e0   : > { %v777_v47 = vadd.f32 %v1804_v46, %v1553_v31  ;;  %v768_v48 = vpop.f32.mrb[5].mxu1 }
 0x1e1   : > { %v769_v49 = vadd.f32 %v1553_v31, %v768_v48  ;;  %v1805_v50 = vpop.f32.mrb[6].mxu1  ;;  %1830 = vmatprep.mubr.bf16.mxu0 %v831_v45 }
 0x1e2   : > { %v780_v51 = vadd.f32 %v1805_v50, %v1553_v31  ;;  %v771_v52 = vpop.f32.mrb[7].mxu1  ;;  %1831 = vmatmul.mubr.bf16.vlgmr.msra.gmra.mrb[16].mxu0 %v832_v44  ;;  %v821_v54 = vmax.f32 %v777_v47, 0.0 }
 0x1e3   : > { %v772_v53 = vadd.f32 %v1553_v31, %v771_v52  ;;  %v819_v56 = vmax.f32 %v769_v49, 0.0  ;;  %1879 = vmatpush3.bf16.msra.mxu0 %v1974_v26 }
 0x1e4   : > { %v822_v55 = vmax.f32 %v780_v51, 0.0  ;;  %1880 = vmatprep.subr.bf16.mxu0 %v1975_v27 }
 0x1e5   : > { %v820_v57 = vmax.f32 %v772_v53, 0.0 }
 0x1e6   : > { %v834_v58 = vpack.c.bf16 %v822_v55, %v821_v54 }
 0x1e7   : > { %v833_v59 = vpack.c.bf16 %v820_v57, %v819_v56  ;;  %v1808_v60 = vpop.f32.mrb[8].mxu1  ;;  %1881 = vmatpush3.bf16.msra.mxu0 %v1975_v27 }
 0x1e8   : > { %v793_v61 = vadd.f32 %v1808_v60, %v1553_v31  ;;  %v784_v62 = vpop.f32.mrb[9].mxu1  ;;  %1882 = vmatprep.subr.bf16.mxu0 %v1976_v28 }
 0x1e9   : > { %v785_v63 = vadd.f32 %v1553_v31, %v784_v62  ;;  %v1809_v0 = vpop.f32.mrb[10].mxu1  ;;  %1834 = vmatprep.mubr.bf16.mxu0 %v833_v59 }
 0x1ea   : > { %v796_v1 = vadd.f32 %v1809_v0, %v1553_v31  ;;  %v787_v2 = vpop.f32.mrb[11].mxu1  ;;  %1835 = vmatmul.mubr.bf16.gmra.mrb[20].mxu0 %v834_v58  ;;  %v825_v4 = vmax.f32 %v793_v61, 0.0 }
 0x1eb   : > { %v788_v3 = vadd.f32 %v1553_v31, %v787_v2  ;;  %v823_v6 = vmax.f32 %v785_v63, 0.0  ;;  %1883 = vmatpush3.bf16.msra.mxu0 %v1976_v28 }
 0x1ec   : > { %v826_v5 = vmax.f32 %v796_v1, 0.0  ;;  %1884 = vmatprep.subr.bf16.mxu0 %v2190_v29 }
 0x1ed   : > { %v824_v7 = vmax.f32 %v788_v3, 0.0 }
 0x1ee   : > { %v836_v8 = vpack.c.bf16 %v826_v5, %v825_v4 }
 0x1ef   : > { %v835_v9 = vpack.c.bf16 %v824_v7, %v823_v6  ;;  %v1812_v10 = vpop.f32.mrb[12].mxu1  ;;  %1885 = vmatpush3.bf16.msra.mxu0 %v2190_v29 }
 0x1f0   : > { %v809_v11 = vadd.f32 %v1812_v10, %v1553_v31  ;;  %v800_v12 = vpop.f32.mrb[13].mxu1  ;;  %1886 = vmatprep.subr.bf16.mxu0 %v2196_v30 }
 0x1f1   : > { %v801_v13 = vadd.f32 %v1553_v31, %v800_v12  ;;  %v1813_v14 = vpop.f32.mrb[14].mxu1  ;;  %1838 = vmatprep.mubr.bf16.mxu0 %v835_v9 }
 0x1f2   : > { %v812_v15 = vadd.f32 %v1813_v14, %v1553_v31  ;;  %v803_v16 = vpop.f32.mrb[15].mxu1  ;;  %1839 = vmatmul.mubr.bf16.gmra.mrb[24].mxu0 %v836_v8  ;;  %v829_v18 = vmax.f32 %v809_v11, 0.0 }
 0x1f3   : > { %v804_v17 = vadd.f32 %v1553_v31, %v803_v16  ;;  %v827_v20 = vmax.f32 %v801_v13, 0.0  ;;  %v2203_v31 = vld [vmem:[%s2274_s9 + $0x28] sm:$0xff]   ;;  %1887 = vmatpush3.bf16.msra.mxu0 %v2196_v30 }
 0x1f4   : > { %v830_v19 = vmax.f32 %v812_v15, 0.0  ;;  %1888 = vmatprep.subr.bf16.mxu0 %v2203_v31 }
 0x1f5   : > { %v828_v21 = vmax.f32 %v804_v17, 0.0 }
 0x1f6   : > { %v838_v22 = vpack.c.bf16 %v830_v19, %v829_v18 }
 0x1f7   : > { %v837_v23 = vpack.c.bf16 %v828_v21, %v827_v20  ;;  %1889 = vmatpush3.bf16.msra.mxu0 %v2203_v31 }
 0x1f8   : > { %1890 = vmatprep.subr.bf16.mxu0 %v1980_v25 }
 0x1f9   : > { %1842 = vmatprep.mubr.bf16.mxu0 %v837_v23 }
 0x1fa   : > { %1843 = vmatmul.mubr.bf16.gmra.mrb[28].mxu0 %v838_v22 }
 0x1fb   : > { %1891 = vmatpush3.bf16.msra.mxu0 %v1980_v25 }
 0x2b5   : > { %v1832_v33 = vpop.f32.mrb[16].mxu0 }
 0x2b6   : > { %v953_v34 = vadd.f32 %v1832_v33, %v2211_v32  ;;  %v944_v35 = vpop.f32.mrb[17].mxu0 }
 0x2b7   : > { %v945_v36 = vadd.f32 %v2211_v32, %v944_v35  ;;  %v1833_v37 = vpop.f32.mrb[18].mxu0 }
 0x2b8   : > { %v956_v38 = vadd.f32 %v1833_v37, %v2211_v32  ;;  %v947_v39 = vpop.f32.mrb[19].mxu0  ;;  %v1009_v41 = vmax.f32 %v953_v34, 0.0 }
 0x2b9   : > { %v948_v40 = vadd.f32 %v2211_v32, %v947_v39  ;;  %v1007_v43 = vmax.f32 %v945_v36, 0.0 }
 0x2ba   : > { %v1010_v42 = vmax.f32 %v956_v38, 0.0 }
 0x2bb   : > { %v1008_v44 = vmax.f32 %v948_v40, 0.0 }
 0x2bc   : > { %v1024_v45 = vpack.c.bf16 %v1010_v42, %v1009_v41 }
 0x2bd   : > { %v1023_v46 = vpack.c.bf16 %v1008_v44, %v1007_v43  ;;  %v1836_v47 = vpop.f32.mrb[20].mxu0 }
 0x2be   : > { %v969_v48 = vadd.f32 %v1836_v47, %v2211_v32  ;;  %v960_v49 = vpop.f32.mrb[21].mxu0 }
 0x2bf   : > { %v961_v50 = vadd.f32 %v2211_v32, %v960_v49  ;;  %v1837_v51 = vpop.f32.mrb[22].mxu0  ;;  %1862 = vmatprep.mubr.bf16.mxu1 %v1023_v46 }
 0x2c0   : > { %v972_v52 = vadd.f32 %v1837_v51, %v2211_v32  ;;  %v963_v53 = vpop.f32.mrb[23].mxu0  ;;  %1863 = vmatmul.mubr.bf16.vlgmr.msra.gmra.mrb[16].mxu1 %v1024_v45  ;;  %v1013_v55 = vmax.f32 %v969_v48, 0.0 }
 0x2c1   : > { %v964_v54 = vadd.f32 %v2211_v32, %v963_v53  ;;  %1918 = vmatpush3.bf16.msra.mxu1 %v1974_v26  ;;  %v1011_v57 = vmax.f32 %v961_v50, 0.0  ;;  %v1981_v26 = vld [vmem:[%s2274_s9 + $0x38] sm:$0xff]  }
 0x2c2   : > { %v1014_v56 = vmax.f32 %v972_v52, 0.0  ;;  %1911 = vmatprep.subr.bf16.mxu1 %v1975_v27  ;;  %1892 = vmatprep.subr.bf16.mxu0 %v1981_v26 }
 0x2c3   : > { %v1012_v58 = vmax.f32 %v964_v54, 0.0  ;;  %1893 = vmatpush3.bf16.msra.mxu0 %v1981_v26 }
 0x2c4   : > { %v1026_v59 = vpack.c.bf16 %v1014_v56, %v1013_v55 }
 0x2c5   : > { %v1025_v60 = vpack.c.bf16 %v1012_v58, %v1011_v57  ;;  %v1840_v61 = vpop.f32.mrb[24].mxu0  ;;  %1919 = vmatpush3.bf16.msra.mxu1 %v1975_v27  ;;  %v1571_v27 = vld [vmem:[%s2273_s8] ss:$0 sm:$0xff] }
 0x2c6   : > { %v985_v62 = vadd.f32 %v1840_v61, %v2211_v32  ;;  %v976_v63 = vpop.f32.mrb[25].mxu0  ;;  %1912 = vmatprep.subr.bf16.mxu1 %v1976_v28 }
 0x2c7   : > { %v977_v0 = vadd.f32 %v2211_v32, %v976_v63  ;;  %v1841_v1 = vpop.f32.mrb[26].mxu0  ;;  %1866 = vmatprep.mubr.bf16.mxu1 %v1025_v60 }
 0x2c8   : > { %v988_v2 = vadd.f32 %v1841_v1, %v2211_v32  ;;  %v979_v3 = vpop.f32.mrb[27].mxu0  ;;  %1867 = vmatmul.mubr.bf16.gmra.mrb[20].mxu1 %v1026_v59  ;;  %v1017_v5 = vmax.f32 %v985_v62, 0.0 }
 0x2c9   : > { %v980_v4 = vadd.f32 %v2211_v32, %v979_v3  ;;  %1920 = vmatpush3.bf16.msra.mxu1 %v1976_v28  ;;  %v1015_v7 = vmax.f32 %v977_v0, 0.0 }
 0x2ca   : > { %v1018_v6 = vmax.f32 %v988_v2, 0.0  ;;  %1913 = vmatprep.subr.bf16.mxu1 %v2190_v29 }
 0x2cb   : > { %v1016_v8 = vmax.f32 %v980_v4, 0.0 }
 0x2cc   : > { %v1028_v9 = vpack.c.bf16 %v1018_v6, %v1017_v5 }
 0x2cd   : > { %v1027_v10 = vpack.c.bf16 %v1016_v8, %v1015_v7  ;;  %v1844_v11 = vpop.f32.mrb[28].mxu0  ;;  %1921 = vmatpush3.bf16.msra.mxu1 %v2190_v29 }
 0x2ce   : > { %v1001_v12 = vadd.f32 %v1844_v11, %v2211_v32  ;;  %v992_v13 = vpop.f32.mrb[29].mxu0  ;;  %1914 = vmatprep.subr.bf16.mxu1 %v2196_v30 }
 0x2cf   : > { %v993_v14 = vadd.f32 %v2211_v32, %v992_v13  ;;  %v1845_v15 = vpop.f32.mrb[30].mxu0  ;;  %1870 = vmatprep.mubr.bf16.mxu1 %v1027_v10 }
 0x2d0   : > { %v1004_v16 = vadd.f32 %v1845_v15, %v2211_v32  ;;  %v995_v17 = vpop.f32.mrb[31].mxu0  ;;  %1871 = vmatmul.mubr.bf16.gmra.mrb[24].mxu1 %v1028_v9  ;;  %v1021_v19 = vmax.f32 %v1001_v12, 0.0 }
 0x2d1   : > { %v996_v18 = vadd.f32 %v2211_v32, %v995_v17  ;;  %1922 = vmatpush3.bf16.msra.mxu1 %v2196_v30  ;;  %v1019_v21 = vmax.f32 %v993_v14, 0.0 }
 0x2d2   : > { %v1022_v20 = vmax.f32 %v1004_v16, 0.0  ;;  %1915 = vmatprep.subr.bf16.mxu1 %v2203_v31 }
 0x2d3   : > { %v1020_v22 = vmax.f32 %v996_v18, 0.0 }
 0x2d4   : > { %v1030_v23 = vpack.c.bf16 %v1022_v20, %v1021_v19 }
 0x2d5   : > { %v1029_v24 = vpack.c.bf16 %v1020_v22, %v1019_v21  ;;  %1923 = vmatpush3.bf16.msra.mxu1 %v2203_v31  ;;  %v1580_v21 = vld [vmem:[%s2275_s10] ss:$0 sm:$0xff] }
 0x2d6   : > { %1916 = vmatprep.subr.bf16.mxu1 %v1980_v25 }
 0x2d7   : > { %1874 = vmatprep.mubr.bf16.mxu1 %v1029_v24 }
 0x2d8   : > { %1875 = vmatmul.mubr.bf16.gmra.mrb[28].mxu1 %v1030_v23 }
 0x2d9   : > { %1924 = vmatpush3.bf16.msra.mxu1 %v1980_v25 }
 0x2da   : > { %1917 = vmatprep.subr.bf16.mxu1 %v1981_v26 }
 0x2dd   : > { %1925 = vmatpush3.bf16.msra.mxu1 %v1981_v26 }
 0x393   : > { %v1864_v28 = vpop.f32.mrb[16].mxu1 }
 0x394   : > { %v1145_v29 = vadd.f32 %v1864_v28, %v1571_v27  ;;  %v1136_v30 = vpop.f32.mrb[17].mxu1 }
 0x395   : > { %v1137_v31 = vadd.f32 %v1571_v27, %v1136_v30  ;;  %v1865_v32 = vpop.f32.mrb[18].mxu1 }
 0x396   : > { %v1148_v33 = vadd.f32 %v1865_v32, %v1571_v27  ;;  %v1139_v34 = vpop.f32.mrb[19].mxu1  ;;  %v1201_v36 = vmax.f32 %v1145_v29, 0.0 }
 0x397   : > { %v1140_v35 = vadd.f32 %v1571_v27, %v1139_v34  ;;  %v1199_v38 = vmax.f32 %v1137_v31, 0.0 }
 0x398   : > { %v1202_v37 = vmax.f32 %v1148_v33, 0.0 }
 0x399   : > { %v1200_v39 = vmax.f32 %v1140_v35, 0.0 }
 0x39a   : > { %v1216_v40 = vpack.c.bf16 %v1202_v37, %v1201_v36 }
 0x39b   : > { %v1215_v41 = vpack.c.bf16 %v1200_v39, %v1199_v38  ;;  %v1868_v42 = vpop.f32.mrb[20].mxu1 }
 0x39c   : > { %v1161_v43 = vadd.f32 %v1868_v42, %v1571_v27  ;;  %v1152_v44 = vpop.f32.mrb[21].mxu1 }
 0x39d   : > { %v1153_v45 = vadd.f32 %v1571_v27, %v1152_v44  ;;  %v1869_v46 = vpop.f32.mrb[22].mxu1  ;;  %1894 = vmatprep.mubr.bf16.mxu0 %v1215_v41 }
 0x39e   : > { %v1164_v47 = vadd.f32 %v1869_v46, %v1571_v27  ;;  %v1155_v48 = vpop.f32.mrb[23].mxu1  ;;  %1895 = vmatmul.mubr.bf16.vlgmr.msra.gmra.mrb[32].mxu0 %v1216_v40  ;;  %v1205_v50 = vmax.f32 %v1161_v43, 0.0 }
 0x39f   : > { %v1156_v49 = vadd.f32 %v1571_v27, %v1155_v48  ;;  %v1203_v52 = vmax.f32 %v1153_v45, 0.0 }
 0x3a0   : > { %v1206_v51 = vmax.f32 %v1164_v47, 0.0 }
 0x3a1   : > { %v1204_v53 = vmax.f32 %v1156_v49, 0.0 }
 0x3a2   : > { %v1218_v54 = vpack.c.bf16 %v1206_v51, %v1205_v50 }
 0x3a3   : > { %v1217_v55 = vpack.c.bf16 %v1204_v53, %v1203_v52  ;;  %v1872_v56 = vpop.f32.mrb[24].mxu1 }
 0x3a4   : > { %v1177_v57 = vadd.f32 %v1872_v56, %v1571_v27  ;;  %v1168_v58 = vpop.f32.mrb[25].mxu1 }
 0x3a5   : > { %v1169_v59 = vadd.f32 %v1571_v27, %v1168_v58  ;;  %v1873_v60 = vpop.f32.mrb[26].mxu1  ;;  %1898 = vmatprep.mubr.bf16.mxu0 %v1217_v55 }
 0x3a6   : > { %v1180_v61 = vadd.f32 %v1873_v60, %v1571_v27  ;;  %v1171_v62 = vpop.f32.mrb[27].mxu1  ;;  %1899 = vmatmul.mubr.bf16.gmra.mrb[36].mxu0 %v1218_v54  ;;  %v1209_v0 = vmax.f32 %v1177_v57, 0.0 }
 0x3a7   : > { %v1172_v63 = vadd.f32 %v1571_v27, %v1171_v62  ;;  %v1207_v2 = vmax.f32 %v1169_v59, 0.0 }
 0x3a8   : > { %v1210_v1 = vmax.f32 %v1180_v61, 0.0 }
 0x3a9   : > { %v1208_v3 = vmax.f32 %v1172_v63, 0.0 }
 0x3aa   : > { %v1220_v4 = vpack.c.bf16 %v1210_v1, %v1209_v0 }
 0x3ab   : > { %v1219_v5 = vpack.c.bf16 %v1208_v3, %v1207_v2  ;;  %v1876_v6 = vpop.f32.mrb[28].mxu1 }
 0x3ac   : > { %v1193_v7 = vadd.f32 %v1876_v6, %v1571_v27  ;;  %v1184_v8 = vpop.f32.mrb[29].mxu1 }
 0x3ad   : > { %v1185_v9 = vadd.f32 %v1571_v27, %v1184_v8  ;;  %v1877_v10 = vpop.f32.mrb[30].mxu1  ;;  %1902 = vmatprep.mubr.bf16.mxu1 %v1219_v5 }
 0x3ae   : > { %v1196_v11 = vadd.f32 %v1877_v10, %v1571_v27  ;;  %v1187_v12 = vpop.f32.mrb[31].mxu1  ;;  %1903 = vmatmul.mubr.bf16.vlgmr.msra.gmra.mrb[32].mxu1 %v1220_v4  ;;  %v1213_v14 = vmax.f32 %v1193_v7, 0.0 }
 0x3af   : > { %v1188_v13 = vadd.f32 %v1571_v27, %v1187_v12  ;;  %v1211_v16 = vmax.f32 %v1185_v9, 0.0 }
 0x3b0   : > { %v1214_v15 = vmax.f32 %v1196_v11, 0.0 }
 0x3b1   : > { %v1212_v17 = vmax.f32 %v1188_v13, 0.0 }
 0x3b2   : > { %v1222_v18 = vpack.c.bf16 %v1214_v15, %v1213_v14 }
 0x3b3   : > { %v1221_v19 = vpack.c.bf16 %v1212_v17, %v1211_v16 }
 0x3b5   : > { %1906 = vmatprep.mubr.bf16.mxu1 %v1221_v19 }
 0x3b6   : > { %1907 = vmatmul.mubr.bf16.gmra.mrb[36].mxu1 %v1222_v18 }
 0x471   : > { %v1896_v20 = vpop.f32.mrb[32].mxu0 }
 0x472   : > { %v1328_v22 = vpop.f32.mrb[33].mxu0  ;;  %v1337_v24 = vadd.f32 %v1896_v20, %v1580_v21 }
 0x473   : > { %v1897_v23 = vpop.f32.mrb[34].mxu0  ;;  %v1329_v27 = vadd.f32 %v1580_v21, %v1328_v22 }
 0x474   : > { %v1340_v25 = vadd.f32 %v1897_v23, %v1580_v21  ;;  %v1331_v26 = vpop.f32.mrb[35].mxu0 }
 0x475   : > { %v1332_v28 = vadd.f32 %v1580_v21, %v1331_v26 }
 0x476   : > { %v1631_v29 = vpack.c.bf16 %v1340_v25, %v1337_v24 }
 0x477   : > { %v1626_v30 = vpack.c.bf16 %v1332_v28, %v1329_v27 }
 0x478   : > { %1663 = vst [vmem:[%s2252_s19 + $0x8] sm:$0xff] %v1631_v29  }
 0x479   : > { %1627 = vst [vmem:[%s2252_s19] sm:$0xff] %v1626_v30   ;;  %v1900_v31 = vpop.f32.mrb[36].mxu0 }
 0x47a   : > { %v1344_v32 = vpop.f32.mrb[37].mxu0  ;;  %v1353_v34 = vadd.f32 %v1900_v31, %v1580_v21 }
 0x47b   : > { %v1901_v33 = vpop.f32.mrb[38].mxu0  ;;  %v1345_v37 = vadd.f32 %v1580_v21, %v1344_v32 }
 0x47c   : > { %v1356_v35 = vadd.f32 %v1901_v33, %v1580_v21  ;;  %v1347_v36 = vpop.f32.mrb[39].mxu0 }
 0x47d   : > { %v1348_v38 = vadd.f32 %v1580_v21, %v1347_v36 }
 0x47e   : > { %v1641_v39 = vpack.c.bf16 %v1356_v35, %v1353_v34 }
 0x47f   : > { %v1636_v40 = vpack.c.bf16 %v1348_v38, %v1345_v37 }
 0x480   : > { %1665 = vst [vmem:[%s2252_s19 + $0x18] sm:$0xff] %v1641_v39  }
 0x481   : > { %1664 = vst [vmem:[%s2252_s19 + $0x10] sm:$0xff] %v1636_v40   ;;  %v1904_v41 = vpop.f32.mrb[32].mxu1 }
 0x482   : > { %v1360_v42 = vpop.f32.mrb[33].mxu1  ;;  %v1369_v44 = vadd.f32 %v1904_v41, %v1580_v21 }
 0x483   : > { %v1905_v43 = vpop.f32.mrb[34].mxu1  ;;  %v1361_v47 = vadd.f32 %v1580_v21, %v1360_v42 }
 0x484   : > { %v1372_v45 = vadd.f32 %v1905_v43, %v1580_v21  ;;  %v1363_v46 = vpop.f32.mrb[35].mxu1 }
 0x485   : > { %v1364_v48 = vadd.f32 %v1580_v21, %v1363_v46 }
 0x486   : > { %v1651_v49 = vpack.c.bf16 %v1372_v45, %v1369_v44 }
 0x487   : > { %v1646_v50 = vpack.c.bf16 %v1364_v48, %v1361_v47 }
 0x488   : > { %1667 = vst [vmem:[%s2252_s19 + $0x28] sm:$0xff] %v1651_v49  }
 0x489   : > { %1666 = vst [vmem:[%s2252_s19 + $0x20] sm:$0xff] %v1646_v50   ;;  %v1908_v51 = vpop.f32.mrb[36].mxu1 }
 0x48a   : > { %v1376_v52 = vpop.f32.mrb[37].mxu1  ;;  %v1385_v54 = vadd.f32 %v1908_v51, %v1580_v21 }
 0x48b   : > { %v1909_v53 = vpop.f32.mrb[38].mxu1  ;;  %v1377_v57 = vadd.f32 %v1580_v21, %v1376_v52 }
 0x48c   : > { %v1388_v55 = vadd.f32 %v1909_v53, %v1580_v21  ;;  %v1379_v56 = vpop.f32.mrb[39].mxu1 }
 0x48d   : > { %v1380_v58 = vadd.f32 %v1580_v21, %v1379_v56 }
 0x48e   : > { %v1661_v59 = vpack.c.bf16 %v1388_v55, %v1385_v54 }
 0x48f   : > { %v1656_v60 = vpack.c.bf16 %v1380_v58, %v1377_v57 }
 0x490   : > { %1669 = vst [vmem:[%s2252_s19 + $0x38] sm:$0xff] %v1661_v59  }
 0x491   : > { %1668 = vst [vmem:[%s2252_s19 + $0x30] sm:$0xff] %v1656_v60  }
 0x492 PF: > { %s21_s17 = sadd.s32 1, %s1988_s17  }
 0x493   : > { %p18_p4 = scmp.ge.s32.totalorder %s21_s17, 4  }
 0x495   :  { %20 = sbr.rel (!%p18_p4) target bundleno = 1 (0x1), region = 94 }

// kernel: dense_model_forward.1
= control target key start
LH: loop header
LB: loop body
LE: loop exit
PB: predicated region body
PF: predicated region fallthrough
CT: control target
= control target key end

     0   :  { %s2050_s17 = smov 0   ;;  %s2265_s0 = inlined_call_operand.vmem [shape: bf16[256,128], index: 0, kind: input, shape index: {}]   ;;  %s2266_s1 = inlined_call_operand.vmem [shape: bf16[128,128], index: 1, kind: input, shape index: {}]   ;;  %s2267_s2 = inlined_call_operand.vmem [shape: f32[1,128], index: 2, kind: input, shape index: {}]   ;;  %s2268_s3 = inlined_call_operand.vmem [shape: bf16[128,128], index: 3, kind: input, shape index: {}]   ;;  %s2269_s4 = inlined_call_operand.vmem [shape: f32[1,128], index: 4, kind: input, shape index: {}]   ;;  %s2270_s5 = inlined_call_operand.vmem [shape: bf16[128,128], index: 5, kind: input, shape index: {}]   ;;  %s2271_s6 = inlined_call_operand.vmem [shape: f32[1,128], index: 6, kind: input, shape index: {}]   ;;  %s2272_s7 = inlined_call_operand.vmem [shape: bf16[128,128], index: 7, kind: input, shape index: {}]   ;;  %s2273_s8 = inlined_call_operand.vmem [shape: f32[1,128], index: 8, kind: input, shape index: {}]   ;;  %s2274_s9 = inlined_call_operand.vmem [shape: bf16[128,128], index: 9, kind: input, shape index: {}]   ;;  %s2275_s10 = inlined_call_operand.vmem [shape: f32[1,128], index: 10, kind: input, shape index: {}]   ;;  %s2276_s11 = inlined_call_operand.vmem [shape: bf16[256,128], index: 11, kind: output, shape index: {}]  }
   0x1 LB: > { %s1527_s18 = sadd.s32 4294967295, %s1988_s17   ;;  %p1531_p0 = scmp.ge.s32.totalorder %s1988_s17, 1  ;;  %s1988_s17 = sphi %s2050_s17, %s21_s17  }
   0x2   : > { %p338_p1 = scmp.lt.s32.totalorder %s1988_s17, 3 }
   0x4   : > { %p339_p2 = pnand %p1531_p0, %p338_p1 }
   0x5   : > { %v1934_v0 = vld [vmem:[%s2266_s1] sm:$0xff] (!%p339_p2)   ;;  %s1532_s21 = sshll.u32 (!%p339_p2), %s1527_s18, 4  ;;  %v1935_v1 = vld [vmem:[%s2266_s1 + $0x8] sm:$0xff] (!%p339_p2)   ;;  %v1936_v2 = vld [vmem:[%s2266_s1 + $0x10] sm:$0xff] (!%p339_p2)  }
   0x6   : > { %342 = sbr.rel (%p339_p2) target bundleno = 1170 (0x492), region = 64  ;;  %p379_p3 = scmp.lt.s32.totalorder (!%p339_p2), %s1532_s21, 31  ;;  %1750 = vmatprep.subr.bf16.mxu0 (!%p339_p2), %v1934_v0  ;;  %v1937_v3 = vld [vmem:[%s2266_s1 + $0x18] sm:$0xff] (!%p339_p2)   ;;  %v1938_v5 = vld [vmem:[%s2266_s1 + $0x20] sm:$0xff] (!%p339_p2)   ;;  %v1939_v6 = vld [vmem:[%s2266_s1 + $0x28] sm:$0xff] (!%p339_p2)  }
   0x7   : > { %1751 = vmatpush3.bf16.msra.mxu0 (!%p339_p2), %v1934_v0  ;;  %v1950_v7 = vld [vmem:[%s2268_s3] sm:$0xff] (!%p339_p2)   ;;  %v1951_v8 = vld [vmem:[%s2268_s3 + $0x8] sm:$0xff] (!%p339_p2)   ;;  %v1940_v9 = vld [vmem:[%s2266_s1 + $0x30] sm:$0xff] (!%p339_p2)  }
   0x8   : > { %1752 = vmatprep.subr.bf16.mxu0 (!%p339_p2), %v1935_v1  ;;  %1782 = vmatprep.subr.bf16.mxu1 (!%p339_p2), %v1950_v7  ;;  %v1952_v10 = vld [vmem:[%s2268_s3 + $0x10] sm:$0xff] (!%p339_p2)   ;;  %v1941_v11 = vld [vmem:[%s2266_s1 + $0x38] sm:$0xff] (!%p339_p2)   ;;  %v1954_v13 = vld [vmem:[%s2268_s3 + $0x20] sm:$0xff] (!%p339_p2)  }
   0x9   : > { %1783 = vmatpush3.bf16.msra.mxu1 (!%p339_p2), %v1950_v7  ;;  %v1953_v12 = vld [vmem:[%s2268_s3 + $0x18] sm:$0xff] (!%p339_p2)   ;;  %v1955_v16 = vld [vmem:[%s2268_s3 + $0x28] sm:$0xff] (!%p339_p2)   ;;  %v1956_v22 = vld [vmem:[%s2268_s3 + $0x30] sm:$0xff] (!%p339_p2)  }
   0xa   : > { %1784 = vmatprep.subr.bf16.mxu1 (!%p339_p2), %v1951_v8  ;;  %v1957_v23 = vld [vmem:[%s2268_s3 + $0x38] sm:$0xff] (!%p339_p2)   ;;  %v1958_v24 = vld [vmem:[%s2270_s5] sm:$0xff] (!%p339_p2)   ;;  %v1959_v25 = vld [vmem:[%s2270_s5 + $0x8] sm:$0xff] (!%p339_p2)  }
   0xb   : > { %1753 = vmatpush3.bf16.msra.mxu0 (!%p339_p2), %v1935_v1  ;;  %v1960_v26 = vld [vmem:[%s2270_s5 + $0x10] sm:$0xff] (!%p339_p2)   ;;  %v1961_v27 = vld [vmem:[%s2270_s5 + $0x18] sm:$0xff] (!%p339_p2)   ;;  %v1962_v28 = vld [vmem:[%s2270_s5 + $0x20] sm:$0xff] (!%p339_p2)  }
   0xc   : > { %1754 = vmatprep.subr.bf16.mxu0 (!%p339_p2), %v1936_v2  ;;  %v1963_v29 = vld [vmem:[%s2270_s5 + $0x28] sm:$0xff] (!%p339_p2)   ;;  %v1536_v30 = vld [vmem:[%s2267_s2] ss:$0 sm:$0xff] (!%p339_p2) }
   0xd   : > { %s2278_s21 = smov (!%p379_p3, %s1532_s21), 31  ;;  %1785 = vmatpush3.bf16.msra.mxu1 %v1951_v8 }
   0xe   : > { %s1533_s26 = sshll.u32 %s2278_s21, 2  ;;  %1786 = vmatprep.subr.bf16.mxu1 %v1952_v10 }
   0xf   : > { %s2075_s29 = scalar_lea.vmem %s2265_s0, %s1533_s26  ;;  %1755 = vmatpush3.bf16.msra.mxu0 %v1936_v2  ;;  %s2252_s19 = scalar_lea.vmem %s2276_s11, %s1533_s26 }
  0x10   : > { %v1942_v4 = vld [vmem:[%s2075_s29] sm:$0xff]   ;;  %1756 = vmatprep.subr.bf16.mxu0 %v1937_v3  ;;  %v1943_v14 = vld [vmem:[%s2075_s29 + $0x8] sm:$0xff]   ;;  %v1944_v15 = vld [vmem:[%s2075_s29 + $0x10] sm:$0xff]  }
  0x11   : > { %1766 = vmatprep.mubr.bf16.mxu0 %v1942_v4  ;;  %1787 = vmatpush3.bf16.msra.mxu1 %v1952_v10  ;;  %v1945_v17 = vld [vmem:[%s2075_s29 + $0x18] sm:$0xff]   ;;  %v1946_v18 = vld [vmem:[%s2075_s29 + $0x20] sm:$0xff]   ;;  %v1947_v19 = vld [vmem:[%s2075_s29 + $0x28] sm:$0xff]  }
  0x12   : > { %1788 = vmatprep.subr.bf16.mxu1 %v1953_v12  ;;  %v1948_v20 = vld [vmem:[%s2075_s29 + $0x30] sm:$0xff]   ;;  %v1949_v21 = vld [vmem:[%s2075_s29 + $0x38] sm:$0xff]  }
  0x13   : > { %1757 = vmatpush3.bf16.msra.mxu0 %v1937_v3 }
  0x14   : > { %1758 = vmatprep.subr.bf16.mxu0 %v1938_v5 }
  0x15   : > { %1789 = vmatpush3.bf16.msra.mxu1 %v1953_v12 }
  0x16   : > { %1790 = vmatprep.subr.bf16.mxu1 %v1954_v13 }
  0x17   : > { %1759 = vmatpush3.bf16.msra.mxu0 %v1938_v5 }
  0x18   : > { %1760 = vmatprep.subr.bf16.mxu0 %v1939_v6 }
  0x19   : > { %1791 = vmatpush3.bf16.msra.mxu1 %v1954_v13 }
  0x1a   : > { %1792 = vmatprep.subr.bf16.mxu1 %v1955_v16 }
  0x1b   : > { %1761 = vmatpush3.bf16.msra.mxu0 %v1939_v6 }
  0x1c   : > { %1762 = vmatprep.subr.bf16.mxu0 %v1940_v9 }
  0x1d   : > { %1793 = vmatpush3.bf16.msra.mxu1 %v1955_v16 }
  0x1e   : > { %1794 = vmatprep.subr.bf16.mxu1 %v1956_v22 }
  0x1f   : > { %1763 = vmatpush3.bf16.msra.mxu0 %v1940_v9 }
  0x20   : > { %1764 = vmatprep.subr.bf16.mxu0 %v1941_v11 }
  0x21   : > { %1795 = vmatpush3.bf16.msra.mxu1 %v1956_v22 }
  0x22   : > { %1796 = vmatprep.subr.bf16.mxu1 %v1957_v23 }
  0x23   : > { %1765 = vmatpush3.bf16.msra.mxu0 %v1941_v11 }
  0x24   : > { %1814 = vmatprep.subr.bf16.mxu0 %v1958_v24 }
  0x25   : > { %1797 = vmatpush3.bf16.msra.mxu1 %v1957_v23  ;;  %v1964_v23 = vld [vmem:[%s2270_s5 + $0x30] sm:$0xff]  }
  0x26   : > { %1767 = vmatmul.mubr.bf16.vlgmr.msra.gmra.mrb[0].mxu0 %v1943_v14 }
  0x27   : > { %1770 = vmatprep.mubr.bf16.mxu0 %v1944_v15  ;;  %1815 = vmatpush3.bf16.msra.mxu0 %v1958_v24  ;;  %v1965_v24 = vld [vmem:[%s2270_s5 + $0x38] sm:$0xff]  }
  0x28   : > { %1816 = vmatprep.subr.bf16.mxu0 %v1959_v25 }
  0x2b   : > { %1817 = vmatpush3.bf16.msra.mxu0 %v1959_v25  ;;  %v1966_v25 = vld [vmem:[%s2272_s7] sm:$0xff]  }
  0x2c   : > { %1818 = vmatprep.subr.bf16.mxu0 %v1960_v26  ;;  %1846 = vmatprep.subr.bf16.mxu1 %v1966_v25 }
  0x2e   : > { %1771 = vmatmul.mubr.bf16.gmra.mrb[4].mxu0 %v1945_v17 }
  0x2f   : > { %1774 = vmatprep.mubr.bf16.mxu0 %v1946_v18  ;;  %1819 = vmatpush3.bf16.msra.mxu0 %v1960_v26  ;;  %v1967_v26 = vld [vmem:[%s2272_s7 + $0x8] sm:$0xff]  }
  0x30   : > { %1820 = vmatprep.subr.bf16.mxu0 %v1961_v27 }
  0x33   : > { %1821 = vmatpush3.bf16.msra.mxu0 %v1961_v27  ;;  %v1968_v27 = vld [vmem:[%s2272_s7 + $0x10] sm:$0xff]  }
  0x34   : > { %1822 = vmatprep.subr.bf16.mxu0 %v1962_v28 }
  0x36   : > { %1775 = vmatmul.mubr.bf16.gmra.mrb[8].mxu0 %v1947_v19 }
  0x37   : > { %1778 = vmatprep.mubr.bf16.mxu0 %v1948_v20  ;;  %1823 = vmatpush3.bf16.msra.mxu0 %v1962_v28  ;;  %v1969_v28 = vld [vmem:[%s2272_s7 + $0x18] sm:$0xff]  }
  0x38   : > { %1824 = vmatprep.subr.bf16.mxu0 %v1963_v29 }
  0x3b   : > { %1825 = vmatpush3.bf16.msra.mxu0 %v1963_v29  ;;  %v1970_v29 = vld [vmem:[%s2272_s7 + $0x20] sm:$0xff]  }
  0x3c   : > { %1826 = vmatprep.subr.bf16.mxu0 %v1964_v23 }
  0x3e   : > { %1779 = vmatmul.mubr.bf16.gmra.mrb[12].mxu0 %v1949_v21 }
  0x3f   : > { %1827 = vmatpush3.bf16.msra.mxu0 %v1964_v23 }
  0x40   : > { %1828 = vmatprep.subr.bf16.mxu0 %v1965_v24 }
  0x43   : > { %1829 = vmatpush3.bf16.msra.mxu0 %v1965_v24  ;;  %v1972_v24 = vld [vmem:[%s2272_s7 + $0x30] sm:$0xff]  }
  0xf9   : > { %v1768_v31 = vpop.f32.mrb[0].mxu0 }
  0xfa   : > { %v569_v32 = vadd.f32 %v1768_v31, %v1536_v30  ;;  %v560_v33 = vpop.f32.mrb[1].mxu0  ;;  %v1553_v31 = vld [vmem:[%s2269_s4] ss:$0 sm:$0xff] }
  0xfb   : > { %v561_v34 = vadd.f32 %v1536_v30, %v560_v33  ;;  %v1769_v35 = vpop.f32.mrb[2].mxu0 }
  0xfc   : > { %v572_v36 = vadd.f32 %v1769_v35, %v1536_v30  ;;  %v563_v37 = vpop.f32.mrb[3].mxu0  ;;  %v625_v39 = vmax.f32 %v569_v32, 0.0 }
  0xfd   : > { %v564_v38 = vadd.f32 %v1536_v30, %v563_v37  ;;  %v623_v41 = vmax.f32 %v561_v34, 0.0 }
  0xfe   : > { %v626_v40 = vmax.f32 %v572_v36, 0.0 }
  0xff   : > { %v624_v42 = vmax.f32 %v564_v38, 0.0 }
 0x100   : > { %v640_v43 = vpack.c.bf16 %v626_v40, %v625_v39 }
 0x101   : > { %v1772_v44 = vpop.f32.mrb[4].mxu0  ;;  %v639_v45 = vpack.c.bf16 %v624_v42, %v623_v41 }
 0x102   : > { %v585_v46 = vadd.f32 %v1772_v44, %v1536_v30  ;;  %v576_v47 = vpop.f32.mrb[5].mxu0 }
 0x103   : > { %v577_v48 = vadd.f32 %v1536_v30, %v576_v47  ;;  %v1773_v49 = vpop.f32.mrb[6].mxu0  ;;  %1798 = vmatprep.mubr.bf16.mxu1 %v639_v45 }
 0x104   : > { %v588_v50 = vadd.f32 %v1773_v49, %v1536_v30  ;;  %v579_v51 = vpop.f32.mrb[7].mxu0  ;;  %1799 = vmatmul.mubr.bf16.vlgmr.msra.gmra.mrb[0].mxu1 %v640_v43  ;;  %v629_v53 = vmax.f32 %v585_v46, 0.0 }
 0x105   : > { %v580_v52 = vadd.f32 %v1536_v30, %v579_v51  ;;  %v627_v55 = vmax.f32 %v577_v48, 0.0  ;;  %1847 = vmatpush3.bf16.msra.mxu1 %v1966_v25  ;;  %v1973_v25 = vld [vmem:[%s2272_s7 + $0x38] sm:$0xff]  }
 0x106   : > { %v630_v54 = vmax.f32 %v588_v50, 0.0  ;;  %1848 = vmatprep.subr.bf16.mxu1 %v1967_v26 }
 0x107   : > { %v628_v56 = vmax.f32 %v580_v52, 0.0 }
 0x108   : > { %v642_v57 = vpack.c.bf16 %v630_v54, %v629_v53 }
 0x109   : > { %v641_v58 = vpack.c.bf16 %v628_v56, %v627_v55  ;;  %v1776_v59 = vpop.f32.mrb[8].mxu0  ;;  %1849 = vmatpush3.bf16.msra.mxu1 %v1967_v26  ;;  %v1974_v26 = vld [vmem:[%s2274_s9] sm:$0xff]  }
 0x10a   : > { %v601_v60 = vadd.f32 %v1776_v59, %v1536_v30  ;;  %v592_v61 = vpop.f32.mrb[9].mxu0  ;;  %1850 = vmatprep.subr.bf16.mxu1 %v1968_v27  ;;  %1878 = vmatprep.subr.bf16.mxu0 %v1974_v26 }
 0x10b   : > { %v593_v62 = vadd.f32 %v1536_v30, %v592_v61  ;;  %v1777_v63 = vpop.f32.mrb[10].mxu0  ;;  %1802 = vmatprep.mubr.bf16.mxu1 %v641_v58 }
 0x10c   : > { %v604_v0 = vadd.f32 %v1777_v63, %v1536_v30  ;;  %v595_v1 = vpop.f32.mrb[11].mxu0  ;;  %1803 = vmatmul.mubr.bf16.gmra.mrb[4].mxu1 %v642_v57  ;;  %v633_v3 = vmax.f32 %v601_v60, 0.0 }
 0x10d   : > { %v596_v2 = vadd.f32 %v1536_v30, %v595_v1  ;;  %v631_v5 = vmax.f32 %v593_v62, 0.0  ;;  %1851 = vmatpush3.bf16.msra.mxu1 %v1968_v27  ;;  %v1975_v27 = vld [vmem:[%s2274_s9 + $0x8] sm:$0xff]  }
 0x10e   : > { %v634_v4 = vmax.f32 %v604_v0, 0.0  ;;  %1852 = vmatprep.subr.bf16.mxu1 %v1969_v28 }
 0x10f   : > { %v632_v6 = vmax.f32 %v596_v2, 0.0 }
 0x110   : > { %v644_v7 = vpack.c.bf16 %v634_v4, %v633_v3 }
 0x111   : > { %v643_v8 = vpack.c.bf16 %v632_v6, %v631_v5  ;;  %v1780_v9 = vpop.f32.mrb[12].mxu0  ;;  %1853 = vmatpush3.bf16.msra.mxu1 %v1969_v28  ;;  %v1976_v28 = vld [vmem:[%s2274_s9 + $0x10] sm:$0xff]  }
 0x112   : > { %v617_v10 = vadd.f32 %v1780_v9, %v1536_v30  ;;  %v608_v11 = vpop.f32.mrb[13].mxu0  ;;  %1854 = vmatprep.subr.bf16.mxu1 %v1970_v29 }
 0x113   : > { %v609_v12 = vadd.f32 %v1536_v30, %v608_v11  ;;  %v1781_v13 = vpop.f32.mrb[14].mxu0  ;;  %1806 = vmatprep.mubr.bf16.mxu1 %v643_v8 }
 0x114   : > { %v620_v14 = vadd.f32 %v1781_v13, %v1536_v30  ;;  %v611_v15 = vpop.f32.mrb[15].mxu0  ;;  %1807 = vmatmul.mubr.bf16.gmra.mrb[8].mxu1 %v644_v7  ;;  %v637_v17 = vmax.f32 %v617_v10, 0.0 }
 0x115   : > { %v612_v16 = vadd.f32 %v1536_v30, %v611_v15  ;;  %v635_v19 = vmax.f32 %v609_v12, 0.0  ;;  %v1971_v30 = vld [vmem:[%s2272_s7 + $0x28] sm:$0xff]   ;;  %1855 = vmatpush3.bf16.msra.mxu1 %v1970_v29  ;;  %v2190_v29 = vld [vmem:[%s2274_s9 + $0x18] sm:$0xff]  }
 0x116   : > { %v638_v18 = vmax.f32 %v620_v14, 0.0  ;;  %1856 = vmatprep.subr.bf16.mxu1 %v1971_v30 }
 0x117   : > { %v636_v20 = vmax.f32 %v612_v16, 0.0 }
 0x118   : > { %v646_v21 = vpack.c.bf16 %v638_v18, %v637_v17 }
 0x119   : > { %v645_v22 = vpack.c.bf16 %v636_v20, %v635_v19  ;;  %1857 = vmatpush3.bf16.msra.mxu1 %v1971_v30  ;;  %v2196_v30 = vld [vmem:[%s2274_s9 + $0x20] sm:$0xff]  }
 0x11a   : > { %1858 = vmatprep.subr.bf16.mxu1 %v1972_v24 }
 0x11b   : > { %1810 = vmatprep.mubr.bf16.mxu1 %v645_v22 }
 0x11c   : > { %1811 = vmatmul.mubr.bf16.gmra.mrb[12].mxu1 %v646_v21 }
 0x11d   : > { %1859 = vmatpush3.bf16.msra.mxu1 %v1972_v24 }
 0x11e   : > { %1860 = vmatprep.subr.bf16.mxu1 %v1973_v25 }
 0x121   : > { %1861 = vmatpush3.bf16.msra.mxu1 %v1973_v25  ;;  %v1980_v25 = vld [vmem:[%s2274_s9 + $0x30] sm:$0xff]  }
 0x122   : > { %1910 = vmatprep.subr.bf16.mxu1 %v1974_v26 }
 0x1d7   : > { %v1800_v32 = vpop.f32.mrb[0].mxu1 }
 0x1d8   : > { %v761_v33 = vadd.f32 %v1800_v32, %v1553_v31  ;;  %v752_v34 = vpop.f32.mrb[1].mxu1  ;;  %v2211_v32 = vld [vmem:[%s2271_s6] ss:$0 sm:$0xff] }
 0x1d9   : > { %v753_v35 = vadd.f32 %v1553_v31, %v752_v34  ;;  %v1801_v36 = vpop.f32.mrb[2].mxu1 }
 0x1da   : > { %v764_v37 = vadd.f32 %v1801_v36, %v1553_v31  ;;  %v755_v38 = vpop.f32.mrb[3].mxu1  ;;  %v817_v40 = vmax.f32 %v761_v33, 0.0 }
 0x1db   : > { %v756_v39 = vadd.f32 %v1553_v31, %v755_v38  ;;  %v815_v42 = vmax.f32 %v753_v35, 0.0 }
 0x1dc   : > { %v818_v41 = vmax.f32 %v764_v37, 0.0 }
 0x1dd   : > { %v816_v43 = vmax.f32 %v756_v39, 0.0 }
 0x1de   : > { %v832_v44 = vpack.c.bf16 %v818_v41, %v817_v40 }
 0x1df   : > { %v831_v45 = vpack.c.bf16 %v816_v43, %v815_v42  ;;  %v1804_v46 = vpop.f32.mrb[4].mxu1 }
 0x1e0   : > { %v777_v47 = vadd.f32 %v1804_v46, %v1553_v31  ;;  %v768_v48 = vpop.f32.mrb[5].mxu1 }
 0x1e1   : > { %v769_v49 = vadd.f32 %v1553_v31, %v768_v48  ;;  %v1805_v50 = vpop.f32.mrb[6].mxu1  ;;  %1830 = vmatprep.mubr.bf16.mxu0 %v831_v45 }
 0x1e2   : > { %v780_v51 = vadd.f32 %v1805_v50, %v1553_v31  ;;  %v771_v52 = vpop.f32.mrb[7].mxu1  ;;  %1831 = vmatmul.mubr.bf16.vlgmr.msra.gmra.mrb[16].mxu0 %v832_v44  ;;  %v821_v54 = vmax.f32 %v777_v47, 0.0 }
 0x1e3   : > { %v772_v53 = vadd.f32 %v1553_v31, %v771_v52  ;;  %v819_v56 = vmax.f32 %v769_v49, 0.0  ;;  %1879 = vmatpush3.bf16.msra.mxu0 %v1974_v26 }
 0x1e4   : > { %v822_v55 = vmax.f32 %v780_v51, 0.0  ;;  %1880 = vmatprep.subr.bf16.mxu0 %v1975_v27 }
 0x1e5   : > { %v820_v57 = vmax.f32 %v772_v53, 0.0 }
 0x1e6   : > { %v834_v58 = vpack.c.bf16 %v822_v55, %v821_v54 }
 0x1e7   : > { %v833_v59 = vpack.c.bf16 %v820_v57, %v819_v56  ;;  %v1808_v60 = vpop.f32.mrb[8].mxu1  ;;  %1881 = vmatpush3.bf16.msra.mxu0 %v1975_v27 }
 0x1e8   : > { %v793_v61 = vadd.f32 %v1808_v60, %v1553_v31  ;;  %v784_v62 = vpop.f32.mrb[9].mxu1  ;;  %1882 = vmatprep.subr.bf16.mxu0 %v1976_v28 }
 0x1e9   : > { %v785_v63 = vadd.f32 %v1553_v31, %v784_v62  ;;  %v1809_v0 = vpop.f32.mrb[10].mxu1  ;;  %1834 = vmatprep.mubr.bf16.mxu0 %v833_v59 }
 0x1ea   : > { %v796_v1 = vadd.f32 %v1809_v0, %v1553_v31  ;;  %v787_v2 = vpop.f32.mrb[11].mxu1  ;;  %1835 = vmatmul.mubr.bf16.gmra.mrb[20].mxu0 %v834_v58  ;;  %v825_v4 = vmax.f32 %v793_v61, 0.0 }
 0x1eb   : > { %v788_v3 = vadd.f32 %v1553_v31, %v787_v2  ;;  %v823_v6 = vmax.f32 %v785_v63, 0.0  ;;  %1883 = vmatpush3.bf16.msra.mxu0 %v1976_v28 }
 0x1ec   : > { %v826_v5 = vmax.f32 %v796_v1, 0.0  ;;  %1884 = vmatprep.subr.bf16.mxu0 %v2190_v29 }
 0x1ed   : > { %v824_v7 = vmax.f32 %v788_v3, 0.0 }
 0x1ee   : > { %v836_v8 = vpack.c.bf16 %v826_v5, %v825_v4 }
 0x1ef   : > { %v835_v9 = vpack.c.bf16 %v824_v7, %v823_v6  ;;  %v1812_v10 = vpop.f32.mrb[12].mxu1  ;;  %1885 = vmatpush3.bf16.msra.mxu0 %v2190_v29 }
 0x1f0   : > { %v809_v11 = vadd.f32 %v1812_v10, %v1553_v31  ;;  %v800_v12 = vpop.f32.mrb[13].mxu1  ;;  %1886 = vmatprep.subr.bf16.mxu0 %v2196_v30 }
 0x1f1   : > { %v801_v13 = vadd.f32 %v1553_v31, %v800_v12  ;;  %v1813_v14 = vpop.f32.mrb[14].mxu1  ;;  %1838 = vmatprep.mubr.bf16.mxu0 %v835_v9 }
 0x1f2   : > { %v812_v15 = vadd.f32 %v1813_v14, %v1553_v31  ;;  %v803_v16 = vpop.f32.mrb[15].mxu1  ;;  %1839 = vmatmul.mubr.bf16.gmra.mrb[24].mxu0 %v836_v8  ;;  %v829_v18 = vmax.f32 %v809_v11, 0.0 }
 0x1f3   : > { %v804_v17 = vadd.f32 %v1553_v31, %v803_v16  ;;  %v827_v20 = vmax.f32 %v801_v13, 0.0  ;;  %v2203_v31 = vld [vmem:[%s2274_s9 + $0x28] sm:$0xff]   ;;  %1887 = vmatpush3.bf16.msra.mxu0 %v2196_v30 }
 0x1f4   : > { %v830_v19 = vmax.f32 %v812_v15, 0.0  ;;  %1888 = vmatprep.subr.bf16.mxu0 %v2203_v31 }
 0x1f5   : > { %v828_v21 = vmax.f32 %v804_v17, 0.0 }
 0x1f6   : > { %v838_v22 = vpack.c.bf16 %v830_v19, %v829_v18 }
 0x1f7   : > { %v837_v23 = vpack.c.bf16 %v828_v21, %v827_v20  ;;  %1889 = vmatpush3.bf16.msra.mxu0 %v2203_v31 }
 0x1f8   : > { %1890 = vmatprep.subr.bf16.mxu0 %v1980_v25 }
 0x1f9   : > { %1842 = vmatprep.mubr.bf16.mxu0 %v837_v23 }
 0x1fa   : > { %1843 = vmatmul.mubr.bf16.gmra.mrb[28].mxu0 %v838_v22 }
 0x1fb   : > { %1891 = vmatpush3.bf16.msra.mxu0 %v1980_v25 }
 0x2b5   : > { %v1832_v33 = vpop.f32.mrb[16].mxu0 }
 0x2b6   : > { %v953_v34 = vadd.f32 %v1832_v33, %v2211_v32  ;;  %v944_v35 = vpop.f32.mrb[17].mxu0 }
 0x2b7   : > { %v945_v36 = vadd.f32 %v2211_v32, %v944_v35  ;;  %v1833_v37 = vpop.f32.mrb[18].mxu0 }
 0x2b8   : > { %v956_v38 = vadd.f32 %v1833_v37, %v2211_v32  ;;  %v947_v39 = vpop.f32.mrb[19].mxu0  ;;  %v1009_v41 = vmax.f32 %v953_v34, 0.0 }
 0x2b9   : > { %v948_v40 = vadd.f32 %v2211_v32, %v947_v39  ;;  %v1007_v43 = vmax.f32 %v945_v36, 0.0 }
 0x2ba   : > { %v1010_v42 = vmax.f32 %v956_v38, 0.0 }
 0x2bb   : > { %v1008_v44 = vmax.f32 %v948_v40, 0.0 }
 0x2bc   : > { %v1024_v45 = vpack.c.bf16 %v1010_v42, %v1009_v41 }
 0x2bd   : > { %v1023_v46 = vpack.c.bf16 %v1008_v44, %v1007_v43  ;;  %v1836_v47 = vpop.f32.mrb[20].mxu0 }
 0x2be   : > { %v969_v48 = vadd.f32 %v1836_v47, %v2211_v32  ;;  %v960_v49 = vpop.f32.mrb[21].mxu0 }
 0x2bf   : > { %v961_v50 = vadd.f32 %v2211_v32, %v960_v49  ;;  %v1837_v51 = vpop.f32.mrb[22].mxu0  ;;  %1862 = vmatprep.mubr.bf16.mxu1 %v1023_v46 }
 0x2c0   : > { %v972_v52 = vadd.f32 %v1837_v51, %v2211_v32  ;;  %v963_v53 = vpop.f32.mrb[23].mxu0  ;;  %1863 = vmatmul.mubr.bf16.vlgmr.msra.gmra.mrb[16].mxu1 %v1024_v45  ;;  %v1013_v55 = vmax.f32 %v969_v48, 0.0 }
 0x2c1   : > { %v964_v54 = vadd.f32 %v2211_v32, %v963_v53  ;;  %1918 = vmatpush3.bf16.msra.mxu1 %v1974_v26  ;;  %v1011_v57 = vmax.f32 %v961_v50, 0.0  ;;  %v1981_v26 = vld [vmem:[%s2274_s9 + $0x38] sm:$0xff]  }
 0x2c2   : > { %v1014_v56 = vmax.f32 %v972_v52, 0.0  ;;  %1911 = vmatprep.subr.bf16.mxu1 %v1975_v27  ;;  %1892 = vmatprep.subr.bf16.mxu0 %v1981_v26 }
 0x2c3   : > { %v1012_v58 = vmax.f32 %v964_v54, 0.0  ;;  %1893 = vmatpush3.bf16.msra.mxu0 %v1981_v26 }
 0x2c4   : > { %v1026_v59 = vpack.c.bf16 %v1014_v56, %v1013_v55 }
 0x2c5   : > { %v1025_v60 = vpack.c.bf16 %v1012_v58, %v1011_v57  ;;  %v1840_v61 = vpop.f32.mrb[24].mxu0  ;;  %1919 = vmatpush3.bf16.msra.mxu1 %v1975_v27  ;;  %v1571_v27 = vld [vmem:[%s2273_s8] ss:$0 sm:$0xff] }
 0x2c6   : > { %v985_v62 = vadd.f32 %v1840_v61, %v2211_v32  ;;  %v976_v63 = vpop.f32.mrb[25].mxu0  ;;  %1912 = vmatprep.subr.bf16.mxu1 %v1976_v28 }
 0x2c7   : > { %v977_v0 = vadd.f32 %v2211_v32, %v976_v63  ;;  %v1841_v1 = vpop.f32.mrb[26].mxu0  ;;  %1866 = vmatprep.mubr.bf16.mxu1 %v1025_v60 }
 0x2c8   : > { %v988_v2 = vadd.f32 %v1841_v1, %v2211_v32  ;;  %v979_v3 = vpop.f32.mrb[27].mxu0  ;;  %1867 = vmatmul.mubr.bf16.gmra.mrb[20].mxu1 %v1026_v59  ;;  %v1017_v5 = vmax.f32 %v985_v62, 0.0 }
 0x2c9   : > { %v980_v4 = vadd.f32 %v2211_v32, %v979_v3  ;;  %1920 = vmatpush3.bf16.msra.mxu1 %v1976_v28  ;;  %v1015_v7 = vmax.f32 %v977_v0, 0.0 }
 0x2ca   : > { %v1018_v6 = vmax.f32 %v988_v2, 0.0  ;;  %1913 = vmatprep.subr.bf16.mxu1 %v2190_v29 }
 0x2cb   : > { %v1016_v8 = vmax.f32 %v980_v4, 0.0 }
 0x2cc   : > { %v1028_v9 = vpack.c.bf16 %v1018_v6, %v1017_v5 }
 0x2cd   : > { %v1027_v10 = vpack.c.bf16 %v1016_v8, %v1015_v7  ;;  %v1844_v11 = vpop.f32.mrb[28].mxu0  ;;  %1921 = vmatpush3.bf16.msra.mxu1 %v2190_v29 }
 0x2ce   : > { %v1001_v12 = vadd.f32 %v1844_v11, %v2211_v32  ;;  %v992_v13 = vpop.f32.mrb[29].mxu0  ;;  %1914 = vmatprep.subr.bf16.mxu1 %v2196_v30 }
 0x2cf   : > { %v993_v14 = vadd.f32 %v2211_v32, %v992_v13  ;;  %v1845_v15 = vpop.f32.mrb[30].mxu0  ;;  %1870 = vmatprep.mubr.bf16.mxu1 %v1027_v10 }
 0x2d0   : > { %v1004_v16 = vadd.f32 %v1845_v15, %v2211_v32  ;;  %v995_v17 = vpop.f32.mrb[31].mxu0  ;;  %1871 = vmatmul.mubr.bf16.gmra.mrb[24].mxu1 %v1028_v9  ;;  %v1021_v19 = vmax.f32 %v1001_v12, 0.0 }
 0x2d1   : > { %v996_v18 = vadd.f32 %v2211_v32, %v995_v17  ;;  %1922 = vmatpush3.bf16.msra.mxu1 %v2196_v30  ;;  %v1019_v21 = vmax.f32 %v993_v14, 0.0 }
 0x2d2   : > { %v1022_v20 = vmax.f32 %v1004_v16, 0.0  ;;  %1915 = vmatprep.subr.bf16.mxu1 %v2203_v31 }
 0x2d3   : > { %v1020_v22 = vmax.f32 %v996_v18, 0.0 }
 0x2d4   : > { %v1030_v23 = vpack.c.bf16 %v1022_v20, %v1021_v19 }
 0x2d5   : > { %v1029_v24 = vpack.c.bf16 %v1020_v22, %v1019_v21  ;;  %1923 = vmatpush3.bf16.msra.mxu1 %v2203_v31  ;;  %v1580_v21 = vld [vmem:[%s2275_s10] ss:$0 sm:$0xff] }
 0x2d6   : > { %1916 = vmatprep.subr.bf16.mxu1 %v1980_v25 }
 0x2d7   : > { %1874 = vmatprep.mubr.bf16.mxu1 %v1029_v24 }
 0x2d8   : > { %1875 = vmatmul.mubr.bf16.gmra.mrb[28].mxu1 %v1030_v23 }
 0x2d9   : > { %1924 = vmatpush3.bf16.msra.mxu1 %v1980_v25 }
 0x2da   : > { %1917 = vmatprep.subr.bf16.mxu1 %v1981_v26 }
 0x2dd   : > { %1925 = vmatpush3.bf16.msra.mxu1 %v1981_v26 }
 0x393   : > { %v1864_v28 = vpop.f32.mrb[16].mxu1 }
 0x394   : > { %v1145_v29 = vadd.f32 %v1864_v28, %v1571_v27  ;;  %v1136_v30 = vpop.f32.mrb[17].mxu1 }
 0x395   : > { %v1137_v31 = vadd.f32 %v1571_v27, %v1136_v30  ;;  %v1865_v32 = vpop.f32.mrb[18].mxu1 }
 0x396   : > { %v1148_v33 = vadd.f32 %v1865_v32, %v1571_v27  ;;  %v1139_v34 = vpop.f32.mrb[19].mxu1  ;;  %v1201_v36 = vmax.f32 %v1145_v29, 0.0 }
 0x397   : > { %v1140_v35 = vadd.f32 %v1571_v27, %v1139_v34  ;;  %v1199_v38 = vmax.f32 %v1137_v31, 0.0 }
 0x398   : > { %v1202_v37 = vmax.f32 %v1148_v33, 0.0 }
 0x399   : > { %v1200_v39 = vmax.f32 %v1140_v35, 0.0 }
 0x39a   : > { %v1216_v40 = vpack.c.bf16 %v1202_v37, %v1201_v36 }
 0x39b   : > { %v1215_v41 = vpack.c.bf16 %v1200_v39, %v1199_v38  ;;  %v1868_v42 = vpop.f32.mrb[20].mxu1 }
 0x39c   : > { %v1161_v43 = vadd.f32 %v1868_v42, %v1571_v27  ;;  %v1152_v44 = vpop.f32.mrb[21].mxu1 }
 0x39d   : > { %v1153_v45 = vadd.f32 %v1571_v27, %v1152_v44  ;;  %v1869_v46 = vpop.f32.mrb[22].mxu1  ;;  %1894 = vmatprep.mubr.bf16.mxu0 %v1215_v41 }
 0x39e   : > { %v1164_v47 = vadd.f32 %v1869_v46, %v1571_v27  ;;  %v1155_v48 = vpop.f32.mrb[23].mxu1  ;;  %1895 = vmatmul.mubr.bf16.vlgmr.msra.gmra.mrb[32].mxu0 %v1216_v40  ;;  %v1205_v50 = vmax.f32 %v1161_v43, 0.0 }
 0x39f   : > { %v1156_v49 = vadd.f32 %v1571_v27, %v1155_v48  ;;  %v1203_v52 = vmax.f32 %v1153_v45, 0.0 }
 0x3a0   : > { %v1206_v51 = vmax.f32 %v1164_v47, 0.0 }
 0x3a1   : > { %v1204_v53 = vmax.f32 %v1156_v49, 0.0 }
 0x3a2   : > { %v1218_v54 = vpack.c.bf16 %v1206_v51, %v1205_v50 }
 0x3a3   : > { %v1217_v55 = vpack.c.bf16 %v1204_v53, %v1203_v52  ;;  %v1872_v56 = vpop.f32.mrb[24].mxu1 }
 0x3a4   : > { %v1177_v57 = vadd.f32 %v1872_v56, %v1571_v27  ;;  %v1168_v58 = vpop.f32.mrb[25].mxu1 }
 0x3a5   : > { %v1169_v59 = vadd.f32 %v1571_v27, %v1168_v58  ;;  %v1873_v60 = vpop.f32.mrb[26].mxu1  ;;  %1898 = vmatprep.mubr.bf16.mxu0 %v1217_v55 }
 0x3a6   : > { %v1180_v61 = vadd.f32 %v1873_v60, %v1571_v27  ;;  %v1171_v62 = vpop.f32.mrb[27].mxu1  ;;  %1899 = vmatmul.mubr.bf16.gmra.mrb[36].mxu0 %v1218_v54  ;;  %v1209_v0 = vmax.f32 %v1177_v57, 0.0 }
 0x3a7   : > { %v1172_v63 = vadd.f32 %v1571_v27, %v1171_v62  ;;  %v1207_v2 = vmax.f32 %v1169_v59, 0.0 }
 0x3a8   : > { %v1210_v1 = vmax.f32 %v1180_v61, 0.0 }
 0x3a9   : > { %v1208_v3 = vmax.f32 %v1172_v63, 0.0 }
 0x3aa   : > { %v1220_v4 = vpack.c.bf16 %v1210_v1, %v1209_v0 }
 0x3ab   : > { %v1219_v5 = vpack.c.bf16 %v1208_v3, %v1207_v2  ;;  %v1876_v6 = vpop.f32.mrb[28].mxu1 }
 0x3ac   : > { %v1193_v7 = vadd.f32 %v1876_v6, %v1571_v27  ;;  %v1184_v8 = vpop.f32.mrb[29].mxu1 }
 0x3ad   : > { %v1185_v9 = vadd.f32 %v1571_v27, %v1184_v8  ;;  %v1877_v10 = vpop.f32.mrb[30].mxu1  ;;  %1902 = vmatprep.mubr.bf16.mxu1 %v1219_v5 }
 0x3ae   : > { %v1196_v11 = vadd.f32 %v1877_v10, %v1571_v27  ;;  %v1187_v12 = vpop.f32.mrb[31].mxu1  ;;  %1903 = vmatmul.mubr.bf16.vlgmr.msra.gmra.mrb[32].mxu1 %v1220_v4  ;;  %v1213_v14 = vmax.f32 %v1193_v7, 0.0 }
 0x3af   : > { %v1188_v13 = vadd.f32 %v1571_v27, %v1187_v12  ;;  %v1211_v16 = vmax.f32 %v1185_v9, 0.0 }
 0x3b0   : > { %v1214_v15 = vmax.f32 %v1196_v11, 0.0 }
 0x3b1   : > { %v1212_v17 = vmax.f32 %v1188_v13, 0.0 }
 0x3b2   : > { %v1222_v18 = vpack.c.bf16 %v1214_v15, %v1213_v14 }
 0x3b3   : > { %v1221_v19 = vpack.c.bf16 %v1212_v17, %v1211_v16 }
 0x3b5   : > { %1906 = vmatprep.mubr.bf16.mxu1 %v1221_v19 }
 0x3b6   : > { %1907 = vmatmul.mubr.bf16.gmra.mrb[36].mxu1 %v1222_v18 }
 0x471   : > { %v1896_v20 = vpop.f32.mrb[32].mxu0 }
 0x472   : > { %v1328_v22 = vpop.f32.mrb[33].mxu0  ;;  %v1337_v24 = vadd.f32 %v1896_v20, %v1580_v21 }
 0x473   : > { %v1897_v23 = vpop.f32.mrb[34].mxu0  ;;  %v1329_v27 = vadd.f32 %v1580_v21, %v1328_v22 }
 0x474   : > { %v1340_v25 = vadd.f32 %v1897_v23, %v1580_v21  ;;  %v1331_v26 = vpop.f32.mrb[35].mxu0 }
 0x475   : > { %v1332_v28 = vadd.f32 %v1580_v21, %v1331_v26 }
 0x476   : > { %v1631_v29 = vpack.c.bf16 %v1340_v25, %v1337_v24 }
 0x477   : > { %v1626_v30 = vpack.c.bf16 %v1332_v28, %v1329_v27 }
 0x478   : > { %1663 = vst [vmem:[%s2252_s19 + $0x8] sm:$0xff] %v1631_v29  }
 0x479   : > { %1627 = vst [vmem:[%s2252_s19] sm:$0xff] %v1626_v30   ;;  %v1900_v31 = vpop.f32.mrb[36].mxu0 }
 0x47a   : > { %v1344_v32 = vpop.f32.mrb[37].mxu0  ;;  %v1353_v34 = vadd.f32 %v1900_v31, %v1580_v21 }
 0x47b   : > { %v1901_v33 = vpop.f32.mrb[38].mxu0  ;;  %v1345_v37 = vadd.f32 %v1580_v21, %v1344_v32 }
 0x47c   : > { %v1356_v35 = vadd.f32 %v1901_v33, %v1580_v21  ;;  %v1347_v36 = vpop.f32.mrb[39].mxu0 }
 0x47d   : > { %v1348_v38 = vadd.f32 %v1580_v21, %v1347_v36 }
 0x47e   : > { %v1641_v39 = vpack.c.bf16 %v1356_v35, %v1353_v34 }
 0x47f   : > { %v1636_v40 = vpack.c.bf16 %v1348_v38, %v1345_v37 }
 0x480   : > { %1665 = vst [vmem:[%s2252_s19 + $0x18] sm:$0xff] %v1641_v39  }
 0x481   : > { %1664 = vst [vmem:[%s2252_s19 + $0x10] sm:$0xff] %v1636_v40   ;;  %v1904_v41 = vpop.f32.mrb[32].mxu1 }
 0x482   : > { %v1360_v42 = vpop.f32.mrb[33].mxu1  ;;  %v1369_v44 = vadd.f32 %v1904_v41, %v1580_v21 }
 0x483   : > { %v1905_v43 = vpop.f32.mrb[34].mxu1  ;;  %v1361_v47 = vadd.f32 %v1580_v21, %v1360_v42 }
 0x484   : > { %v1372_v45 = vadd.f32 %v1905_v43, %v1580_v21  ;;  %v1363_v46 = vpop.f32.mrb[35].mxu1 }
 0x485   : > { %v1364_v48 = vadd.f32 %v1580_v21, %v1363_v46 }
 0x486   : > { %v1651_v49 = vpack.c.bf16 %v1372_v45, %v1369_v44 }
 0x487   : > { %v1646_v50 = vpack.c.bf16 %v1364_v48, %v1361_v47 }
 0x488   : > { %1667 = vst [vmem:[%s2252_s19 + $0x28] sm:$0xff] %v1651_v49  }
 0x489   : > { %1666 = vst [vmem:[%s2252_s19 + $0x20] sm:$0xff] %v1646_v50   ;;  %v1908_v51 = vpop.f32.mrb[36].mxu1 }
 0x48a   : > { %v1376_v52 = vpop.f32.mrb[37].mxu1  ;;  %v1385_v54 = vadd.f32 %v1908_v51, %v1580_v21 }
 0x48b   : > { %v1909_v53 = vpop.f32.mrb[38].mxu1  ;;  %v1377_v57 = vadd.f32 %v1580_v21, %v1376_v52 }
 0x48c   : > { %v1388_v55 = vadd.f32 %v1909_v53, %v1580_v21  ;;  %v1379_v56 = vpop.f32.mrb[39].mxu1 }
 0x48d   : > { %v1380_v58 = vadd.f32 %v1580_v21, %v1379_v56 }
 0x48e   : > { %v1661_v59 = vpack.c.bf16 %v1388_v55, %v1385_v54 }
 0x48f   : > { %v1656_v60 = vpack.c.bf16 %v1380_v58, %v1377_v57 }
 0x490   : > { %1669 = vst [vmem:[%s2252_s19 + $0x38] sm:$0xff] %v1661_v59  }
 0x491   : > { %1668 = vst [vmem:[%s2252_s19 + $0x30] sm:$0xff] %v1656_v60  }
 0x492 PF: > { %s21_s17 = sadd.s32 1, %s1988_s17  }
 0x493   : > { %p18_p4 = scmp.ge.s32.totalorder %s21_s17, 4  }
 0x495   :  { %20 = sbr.rel (!%p18_p4) target bundleno = 1 (0x1), region = 94 }

</bundles_post_ra>
